<compile_context>
chip_gen: v5e
topology: v5e:2x2
jax: 0.10.0
libtpu: 0.0.40
codegen_flags: <defaults>
</compile_context>

<pallas_src>
import functools

import jax
import jax.numpy as jnp
from jax.experimental import pallas as pl
from jax.experimental.pallas import tpu as pltpu


# ----------------------------------------------------------------------------
# Fused Pallas kernel: the whole Up block, whole batch, single invocation
# ----------------------------------------------------------------------------
def _up_block_kernel(x1_ref, x2_ref, ops_ref, eop_ref,     # activations + operators
                     upw_ref, upb_ref,                      # MeshConvTranspose (block-diag)
                     w1s_a_ref, w1s_b_ref, b1s_ref,         # conv1 | skip (stacked, block-diag)
                     w2_ref, b2_ref,                         # conv2 (MeshConv, block-diag)
                     w3_ref, b3_ref,                         # conv3 (block-diag)
                     o_ref, *, V, Vc, bneck):
    f32, bf16 = jnp.float32, jnp.bfloat16

    def op_mix(w4_ref, feats):
        """Mix Laplacian / EW-grad / NS-grad features with block-diag coeffs."""
        return (jnp.dot(w4_ref[1], feats[:, :V].astype(bf16),       preferred_element_type=f32)
                + jnp.dot(w4_ref[2], feats[:, V:2 * V].astype(bf16), preferred_element_type=f32)
                + jnp.dot(w4_ref[3], feats[:, 2 * V:].astype(bf16),  preferred_element_type=f32))

    # --- self.up = MeshConvTranspose(half_in, half_in, stride=2) -------------
    # Coarse verts are the first Vc fine verts.  The zero-pad is never
    # materialized: operator features contract only the Vc valid operator rows
    # and the identity path goes through the 0/1 projection matrix `eop`.
    x1_bf = x1_ref[...].astype(bf16)                                   # [B*half_in, Vc]
    x1p = jnp.dot(x1_bf, eop_ref[...], preferred_element_type=f32)     # zero-padded x1 [B*half_in, V]
    f1 = jnp.dot(x1_bf, ops_ref[:Vc, :], preferred_element_type=f32)   # [B*half_in, 3V], K = Vc
    x1_up = (jnp.dot(upw_ref[0], x1p.astype(bf16), preferred_element_type=f32)
             + op_mix(upw_ref, f1) + upb_ref[...])                     # [B*half_in, V]

    # --- cat([x2, x1_up]) + conv1/bn1/relu + skip conv_/bn_ (fused matmul) ----
    t = (jnp.dot(w1s_a_ref[...], x2_ref[...].astype(bf16), preferred_element_type=f32)
         + jnp.dot(w1s_b_ref[...], x1_up.astype(bf16),     preferred_element_type=f32)
         + b1s_ref[...])                                               # [B*(neck+out_ch), V]
    h1 = jnp.maximum(t[:bneck], 0.0)                                   # conv1 + bn1 + relu
    skip = t[bneck:]                                                   # conv_ + bn_

    # --- conv2 (MeshConv) + bn2 + relu ----------------------------------------
    h1_bf = h1.astype(bf16)
    f2 = jnp.dot(h1_bf, ops_ref[...], preferred_element_type=f32)      # [B*neck, 3V], one MXU pass
    h2 = jnp.maximum(jnp.dot(w2_ref[0], h1_bf, preferred_element_type=f32)
                     + op_mix(w2_ref, f2) + b2_ref[...], 0.0)          # [B*neck, V]

    # --- conv3 + bn3, residual add, relu ---------------------------------------
    h3 = jnp.dot(w3_ref[...], h2.astype(bf16), preferred_element_type=f32) + b3_ref[...]
    o_ref[...] = jnp.maximum(h3 + skip, 0.0).astype(o_ref.dtype)       # [B*out_ch, V] lane-dense


def up_forward(x1, x2, p):
    """x1: [B, half_in, Vc] (coarse mesh), x2: [B, half_in, V] (fine mesh)."""
    B, half_in, Vc = x1.shape
    V = x2.shape[2]
    bneck = p['b2'].shape[0]           # B * neck
    bout = p['w3'].shape[0]            # B * out_ch
    out_ch = bout // B

    # Free (row-major, leading-dim-merge) reshapes: batch folded into M.
    x1f = x1.reshape(B * half_in, Vc)
    x2f = x2.reshape(B * half_in, V)

    # Zero-pad "upsampling" as a 0/1 projection matrix (compile-time constant).
    eop = jnp.eye(Vc, V, dtype=jnp.bfloat16)

    operands = (x1f, x2f, p['ops'], eop, p['up_w'], p['up_b'],
                p['w1s_a'], p['w1s_b'], p['b1s'], p['w2'], p['b2'],
                p['w3'], p['b3'])

    bh = B * half_in
    flops = 2 * (bh * Vc * V                       # zero-pad projection
                 + bh * Vc * 3 * V                 # up-conv operator features (K = Vc)
                 + 4 * bh * bh * V                 # up-conv channel mix
                 + (bneck + bout) * bh * V * 2     # conv1 + skip (stacked, 2 dots)
                 + bneck * V * 3 * V               # conv2 operator features
                 + 4 * bneck * bneck * V           # conv2 channel mix
                 + bout * bneck * V)               # conv3
    bytes_accessed = sum(a.size * a.dtype.itemsize for a in operands) + bout * V * 4

    vmem = lambda: pl.BlockSpec(memory_space=pltpu.MemorySpace.VMEM)

    out = pl.pallas_call(
        functools.partial(_up_block_kernel, V=V, Vc=Vc, bneck=bneck),
        out_shape=jax.ShapeDtypeStruct((bout, V), jnp.float32),
        in_specs=[vmem() for _ in operands],
        out_specs=vmem(),
        compiler_params=pltpu.CompilerParams(
            # Demo footprint is < 1 MiB.  For production meshes (V >= 2562) the
            # bf16 ops slab is ~38 MiB: keep it resident and single-buffered
            # (grid=() already implies that) and raise this to ~48-56 MiB on
            # v7x / ~80-100 MiB on v5e-v6e instead of streaming it from HBM.
            vmem_limit_bytes=32 * 1024 * 1024),
        cost_estimate=pl.CostEstimate(flops=flops, transcendentals=0,
                                      bytes_accessed=bytes_accessed),
    )(*operands)
    return out.reshape(B, out_ch, V)


# ----------------------------------------------------------------------------
# Parameter construction (BN folded) + packing into kernel-friendly layouts
# ----------------------------------------------------------------------------
def fold_bn_linear(w, b, gamma, beta):
    """Fold eval-mode BN (mean=0, var=1) into a [Cin, Cout] 1x1 conv."""
    return w * gamma[None, :], gamma * b + beta


def fold_bn_meshconv(coeffs, bias, gamma, beta):
    """Fold eval-mode BN into MeshConv coeffs [Cout, Cin, 4] / bias [Cout]."""
    return coeffs * gamma[:, None, None], gamma * bias + beta


def build_params(key, half_in, out_ch, V):
    """Raw (batch-independent), BN-folded parameters + synthetic operators."""
    in_ch = 2 * half_in
    neck = out_ch
    ks = jax.random.split(key, 24)
    s = 0.1

    def n(i, shape, scale=s):
        return (jax.random.normal(ks[i], shape) * scale).astype(jnp.float32)

    # Synthetic mesh operators (dense stand-ins for sparse mesh_file operators)
    L, Gew, Gns = n(0, (V, V), 0.02), n(1, (V, V), 0.02), n(2, (V, V), 0.02)

    # MeshConvTranspose(half_in -> half_in)
    up_coeffs, up_bias = n(3, (half_in, half_in, 4)), n(4, (half_in,))

    # ResBlockV2(in_ch, neck=out_ch, out_ch)
    w1, b1 = n(5, (in_ch, neck)), n(6, (neck,))
    c2_coeffs, c2_bias = n(7, (neck, neck, 4)), n(8, (neck,))
    w3, b3 = n(9, (neck, out_ch)), n(10, (out_ch,))
    ws, bs = n(11, (in_ch, out_ch)), n(12, (out_ch,))

    # BatchNorm affine params (eval mode, running stats at init values)
    g1, be1 = 1.0 + n(13, (neck,)), n(14, (neck,))
    g2, be2 = 1.0 + n(15, (neck,)), n(16, (neck,))
    g3, be3 = 1.0 + n(17, (out_ch,)), n(18, (out_ch,))
    gs, bes = 1.0 + n(19, (out_ch,)), n(20, (out_ch,))

    w1, b1 = fold_bn_linear(w1, b1, g1, be1)
    c2_coeffs, c2_bias = fold_bn_meshconv(c2_coeffs, c2_bias, g2, be2)
    w3, b3 = fold_bn_linear(w3, b3, g3, be3)
    ws, bs = fold_bn_linear(ws, bs, gs, bes)

    return dict(L=L, Gew=Gew, Gns=Gns,
                up_coeffs=up_coeffs, up_bias=up_bias,
                w1=w1, b1=b1, c2_coeffs=c2_coeffs, c2_bias=c2_bias,
                w3=w3, b3=b3, ws=ws, bs=bs)


def pack_params(raw, B):
    """Pack raw params into the kernel layout for batch size B.

    Channel-mix weights are stored bf16 (single-pass MXU) and block-
    diagonalised over the batch (kron(I_B, W)) so one dot per term processes
    the whole batch with M = B * channels.  Biases stay f32.
    """
    bf16 = jnp.bfloat16
    eye = jnp.eye(B, dtype=jnp.float32)
    bd = lambda w: jnp.kron(eye, w).astype(bf16)
    tile_b = lambda b: jnp.tile(b, B).reshape(-1, 1).astype(jnp.float32)

    half_in = raw['up_coeffs'].shape[0]

    ops = jnp.concatenate([raw['L'].T, raw['Gew'].T, raw['Gns'].T],
                          axis=1).astype(bf16)                    # [V, 3V]

    up_w = jnp.stack([bd(raw['up_coeffs'][:, :, k]) for k in range(4)])
    w2 = jnp.stack([bd(raw['c2_coeffs'][:, :, k]) for k in range(4)])

    w1t, wst = raw['w1'].T, raw['ws'].T                            # [neck,in_ch], [out,in_ch]
    w1s_a = jnp.concatenate([bd(w1t[:, :half_in]), bd(wst[:, :half_in])], axis=0)
    w1s_b = jnp.concatenate([bd(w1t[:, half_in:]), bd(wst[:, half_in:])], axis=0)
    b1s = jnp.concatenate([tile_b(raw['b1']), tile_b(raw['bs'])], axis=0)

    return dict(ops=ops,
                up_w=up_w, up_b=tile_b(raw['up_bias']),
                w1s_a=w1s_a, w1s_b=w1s_b, b1s=b1s,
                w2=w2, b2=tile_b(raw['c2_bias']),
                w3=bd(raw['w3'].T), b3=tile_b(raw['b3']))


# ----------------------------------------------------------------------------
# Pure-JAX reference (same precision policy: bf16 matmul operands, f32 acc)
# ----------------------------------------------------------------------------
def up_forward_ref(x1, x2, raw, ops):
    B, half_in, Vc = x1.shape
    V = x2.shape[2]
    bf16, f32 = jnp.bfloat16, jnp.float32
    x1p = jnp.zeros((B, half_in, V), f32).at[:, :, :Vc].set(x1)

    def mesh_conv(x, coeffs, bias):
        feats = jnp.einsum('bcu,uk->bck', x.astype(bf16), ops,
                           preferred_element_type=f32)
        lap, ew, ns = feats[..., :V], feats[..., V:2 * V], feats[..., 2 * V:]
        c = coeffs.astype(bf16)
        mix = lambda w, y: jnp.einsum('oc,bcv->bov', w, y.astype(bf16),
                                      preferred_element_type=f32)
        return (mix(c[:, :, 0], x) + mix(c[:, :, 1], lap) + mix(c[:, :, 2], ew)
                + mix(c[:, :, 3], ns) + bias[None, :, None])

    def lin(w, b, y):
        return jnp.einsum('io,biv->bov', w.astype(bf16), y.astype(bf16),
                          preferred_element_type=f32) + b[None, :, None]

    x1_up = mesh_conv(x1p, raw['up_coeffs'], raw['up_bias'])
    x = jnp.concatenate([x2, x1_up], axis=1)
    h = jax.nn.relu(lin(raw['w1'], raw['b1'], x))
    h = jax.nn.relu(mesh_conv(h, raw['c2_coeffs'], raw['c2_bias']))
    h3 = lin(raw['w3'], raw['b3'], h)
    skip = lin(raw['ws'], raw['bs'], x)
    return jax.nn.relu(h3 + skip)


if __name__ == "__main__":
    B = 2
    half_in = 4          # in_ch = 8
    out_ch = 16
    V = 256              # fine-mesh vertex count
    Vc = 64              # coarse-mesh vertex count

    key = jax.random.PRNGKey(0)
    k_p, k_x1, k_x2 = jax.random.split(key, 3)

    raw = build_params(k_p, half_in, out_ch, V)
    params = pack_params(raw, B)
    x1 = jax.random.normal(k_x1, (B, half_in, Vc), dtype=jnp.float32)
    x2 = jax.random.normal(k_x2, (B, half_in, V), dtype=jnp.float32)

    out = jax.jit(up_forward)(x1, x2, params)
    out = jax.block_until_ready(out)

    assert out.shape == (B, out_ch, V), out.shape
    assert bool(jnp.all(jnp.isfinite(out)))

    ref = up_forward_ref(x1, x2, raw, params['ops'])
    assert bool(jnp.allclose(out, ref, rtol=2e-2, atol=2e-2)), \
        float(jnp.max(jnp.abs(out - ref)))

    print("KERNEL_OK")
</pallas_src>

<mosaic_0001>
module attributes {stable_mosaic.version = 11 : i64} {
  func.func @_up_block_kernel(%arg0: memref<8x64xf32, #tpu.memory_space<vmem>>, %arg1: memref<8x256xf32, #tpu.memory_space<vmem>>, %arg2: memref<256x768xbf16, #tpu.memory_space<vmem>>, %arg3: memref<64x256xbf16, #tpu.memory_space<vmem>>, %arg4: memref<4x8x8xbf16, #tpu.memory_space<vmem>>, %arg5: memref<8x1xf32, #tpu.memory_space<vmem>>, %arg6: memref<64x8xbf16, #tpu.memory_space<vmem>>, %arg7: memref<64x8xbf16, #tpu.memory_space<vmem>>, %arg8: memref<64x1xf32, #tpu.memory_space<vmem>>, %arg9: memref<4x32x32xbf16, #tpu.memory_space<vmem>>, %arg10: memref<32x1xf32, #tpu.memory_space<vmem>>, %arg11: memref<32x32xbf16, #tpu.memory_space<vmem>>, %arg12: memref<32x1xf32, #tpu.memory_space<vmem>>, %arg13: memref<32x256xf32, #tpu.memory_space<vmem>>) attributes {dimension_semantics = [], scalar_prefetch = 0 : i64, scratch_operands = 0 : i64, tpu.core_type = #tpu.core_type<tc>} {
    %c0 = arith.constant 0 : index
    %c0_0 = arith.constant 0 : index
    %0 = vector.load %arg0[%c0, %c0_0] : memref<8x64xf32, #tpu.memory_space<vmem>>, vector<8x64xf32>
    %1 = arith.truncf %0 : vector<8x64xf32> to vector<8x64xbf16>
    %c0_1 = arith.constant 0 : index
    %c0_2 = arith.constant 0 : index
    %2 = vector.load %arg3[%c0_1, %c0_2] : memref<64x256xbf16, #tpu.memory_space<vmem>>, vector<64x256xbf16>
    %cst = arith.constant dense<0.000000e+00> : vector<8x256xf32>
    %3 = tpu.matmul %1, %2, %cst {dimension_numbers = #tpu.dot_dimension_numbers<[1], [0], [0], [1], [0, 0, 1, 1], [], []>} : vector<8x64xbf16>, vector<64x256xbf16>, vector<8x256xf32> -> vector<8x256xf32>
    %c0_3 = arith.constant 0 : index
    %c0_4 = arith.constant 0 : index
    %4 = vector.load %arg2[%c0_3, %c0_4] : memref<256x768xbf16, #tpu.memory_space<vmem>>, vector<64x768xbf16>
    %cst_5 = arith.constant dense<0.000000e+00> : vector<8x768xf32>
    %5 = tpu.matmul %1, %4, %cst_5 {dimension_numbers = #tpu.dot_dimension_numbers<[1], [0], [0], [1], [0, 0, 1, 1], [], []>} : vector<8x64xbf16>, vector<64x768xbf16>, vector<8x768xf32> -> vector<8x768xf32>
    %c0_6 = arith.constant 0 : index
    %c0_7 = arith.constant 0 : index
    %c0_8 = arith.constant 0 : index
    %6 = vector.load %arg4[%c0_6, %c0_7, %c0_8] : memref<4x8x8xbf16, #tpu.memory_space<vmem>>, vector<1x8x8xbf16>
    %7 = vector.shape_cast %6 : vector<1x8x8xbf16> to vector<8x8xbf16>
    %8 = arith.truncf %3 : vector<8x256xf32> to vector<8x256xbf16>
    %cst_9 = arith.constant dense<0.000000e+00> : vector<8x256xf32>
    %9 = tpu.matmul %7, %8, %cst_9 {dimension_numbers = #tpu.dot_dimension_numbers<[1], [0], [0], [1], [0, 0, 1, 1], [], []>} : vector<8x8xbf16>, vector<8x256xbf16>, vector<8x256xf32> -> vector<8x256xf32>
    %c1 = arith.constant 1 : index
    %c0_10 = arith.constant 0 : index
    %c0_11 = arith.constant 0 : index
    %10 = vector.load %arg4[%c1, %c0_10, %c0_11] : memref<4x8x8xbf16, #tpu.memory_space<vmem>>, vector<1x8x8xbf16>
    %11 = vector.shape_cast %10 : vector<1x8x8xbf16> to vector<8x8xbf16>
    %12 = vector.extract_strided_slice %5 {offsets = [0, 0], sizes = [8, 256], strides = [1, 1]} : vector<8x768xf32> to vector<8x256xf32>
    %13 = arith.truncf %12 : vector<8x256xf32> to vector<8x256xbf16>
    %cst_12 = arith.constant dense<0.000000e+00> : vector<8x256xf32>
    %14 = tpu.matmul %11, %13, %cst_12 {dimension_numbers = #tpu.dot_dimension_numbers<[1], [0], [0], [1], [0, 0, 1, 1], [], []>} : vector<8x8xbf16>, vector<8x256xbf16>, vector<8x256xf32> -> vector<8x256xf32>
    %c2 = arith.constant 2 : index
    %c0_13 = arith.constant 0 : index
    %c0_14 = arith.constant 0 : index
    %15 = vector.load %arg4[%c2, %c0_13, %c0_14] : memref<4x8x8xbf16, #tpu.memory_space<vmem>>, vector<1x8x8xbf16>
    %16 = vector.shape_cast %15 : vector<1x8x8xbf16> to vector<8x8xbf16>
    %17 = vector.extract_strided_slice %5 {offsets = [0, 256], sizes = [8, 256], strides = [1, 1]} : vector<8x768xf32> to vector<8x256xf32>
    %18 = arith.truncf %17 : vector<8x256xf32> to vector<8x256xbf16>
    %cst_15 = arith.constant dense<0.000000e+00> : vector<8x256xf32>
    %19 = tpu.matmul %16, %18, %cst_15 {dimension_numbers = #tpu.dot_dimension_numbers<[1], [0], [0], [1], [0, 0, 1, 1], [], []>} : vector<8x8xbf16>, vector<8x256xbf16>, vector<8x256xf32> -> vector<8x256xf32>
    %20 = arith.addf %14, %19 : vector<8x256xf32>
    %c3 = arith.constant 3 : index
    %c0_16 = arith.constant 0 : index
    %c0_17 = arith.constant 0 : index
    %21 = vector.load %arg4[%c3, %c0_16, %c0_17] : memref<4x8x8xbf16, #tpu.memory_space<vmem>>, vector<1x8x8xbf16>
    %22 = vector.shape_cast %21 : vector<1x8x8xbf16> to vector<8x8xbf16>
    %23 = vector.extract_strided_slice %5 {offsets = [0, 512], sizes = [8, 256], strides = [1, 1]} : vector<8x768xf32> to vector<8x256xf32>
    %24 = arith.truncf %23 : vector<8x256xf32> to vector<8x256xbf16>
    %cst_18 = arith.constant dense<0.000000e+00> : vector<8x256xf32>
    %25 = tpu.matmul %22, %24, %cst_18 {dimension_numbers = #tpu.dot_dimension_numbers<[1], [0], [0], [1], [0, 0, 1, 1], [], []>} : vector<8x8xbf16>, vector<8x256xbf16>, vector<8x256xf32> -> vector<8x256xf32>
    %26 = arith.addf %20, %25 : vector<8x256xf32>
    %27 = arith.addf %9, %26 : vector<8x256xf32>
    %c0_19 = arith.constant 0 : index
    %c0_20 = arith.constant 0 : index
    %28 = vector.load %arg5[%c0_19, %c0_20] : memref<8x1xf32, #tpu.memory_space<vmem>>, vector<8x1xf32>
    %29 = vector.broadcast %28 : vector<8x1xf32> to vector<8x256xf32>
    %30 = arith.addf %27, %29 : vector<8x256xf32>
    %c0_21 = arith.constant 0 : index
    %c0_22 = arith.constant 0 : index
    %31 = vector.load %arg6[%c0_21, %c0_22] : memref<64x8xbf16, #tpu.memory_space<vmem>>, vector<64x8xbf16>
    %c0_23 = arith.constant 0 : index
    %c0_24 = arith.constant 0 : index
    %32 = vector.load %arg1[%c0_23, %c0_24] : memref<8x256xf32, #tpu.memory_space<vmem>>, vector<8x256xf32>
    %33 = arith.truncf %32 : vector<8x256xf32> to vector<8x256xbf16>
    %cst_25 = arith.constant dense<0.000000e+00> : vector<64x256xf32>
    %34 = tpu.matmul %31, %33, %cst_25 {dimension_numbers = #tpu.dot_dimension_numbers<[1], [0], [0], [1], [0, 0, 1, 1], [], []>} : vector<64x8xbf16>, vector<8x256xbf16>, vector<64x256xf32> -> vector<64x256xf32>
    %c0_26 = arith.constant 0 : index
    %c0_27 = arith.constant 0 : index
    %35 = vector.load %arg7[%c0_26, %c0_27] : memref<64x8xbf16, #tpu.memory_space<vmem>>, vector<64x8xbf16>
    %36 = arith.truncf %30 : vector<8x256xf32> to vector<8x256xbf16>
    %cst_28 = arith.constant dense<0.000000e+00> : vector<64x256xf32>
    %37 = tpu.matmul %35, %36, %cst_28 {dimension_numbers = #tpu.dot_dimension_numbers<[1], [0], [0], [1], [0, 0, 1, 1], [], []>} : vector<64x8xbf16>, vector<8x256xbf16>, vector<64x256xf32> -> vector<64x256xf32>
    %38 = arith.addf %34, %37 : vector<64x256xf32>
    %c0_29 = arith.constant 0 : index
    %c0_30 = arith.constant 0 : index
    %39 = vector.load %arg8[%c0_29, %c0_30] : memref<64x1xf32, #tpu.memory_space<vmem>>, vector<64x1xf32>
    %40 = vector.broadcast %39 : vector<64x1xf32> to vector<64x256xf32>
    %41 = arith.addf %38, %40 : vector<64x256xf32>
    %42 = vector.extract_strided_slice %41 {offsets = [0, 0], sizes = [32, 256], strides = [1, 1]} : vector<64x256xf32> to vector<32x256xf32>
    %cst_31 = arith.constant 0.000000e+00 : f32
    %43 = vector.broadcast %cst_31 : f32 to vector<32x256xf32>
    %44 = arith.maximumf %42, %43 : vector<32x256xf32>
    %45 = vector.extract_strided_slice %41 {offsets = [32, 0], sizes = [32, 256], strides = [1, 1]} : vector<64x256xf32> to vector<32x256xf32>
    %46 = arith.truncf %44 : vector<32x256xf32> to vector<32x256xbf16>
    %c0_32 = arith.constant 0 : index
    %c0_33 = arith.constant 0 : index
    %47 = vector.load %arg2[%c0_32, %c0_33] : memref<256x768xbf16, #tpu.memory_space<vmem>>, vector<256x768xbf16>
    %cst_34 = arith.constant dense<0.000000e+00> : vector<32x768xf32>
    %48 = tpu.matmul %46, %47, %cst_34 {dimension_numbers = #tpu.dot_dimension_numbers<[1], [0], [0], [1], [0, 0, 1, 1], [], []>} : vector<32x256xbf16>, vector<256x768xbf16>, vector<32x768xf32> -> vector<32x768xf32>
    %c0_35 = arith.constant 0 : index
    %c0_36 = arith.constant 0 : index
    %c0_37 = arith.constant 0 : index
    %49 = vector.load %arg9[%c0_35, %c0_36, %c0_37] : memref<4x32x32xbf16, #tpu.memory_space<vmem>>, vector<1x32x32xbf16>
    %50 = vector.shape_cast %49 : vector<1x32x32xbf16> to vector<32x32xbf16>
    %cst_38 = arith.constant dense<0.000000e+00> : vector<32x256xf32>
    %51 = tpu.matmul %50, %46, %cst_38 {dimension_numbers = #tpu.dot_dimension_numbers<[1], [0], [0], [1], [0, 0, 1, 1], [], []>} : vector<32x32xbf16>, vector<32x256xbf16>, vector<32x256xf32> -> vector<32x256xf32>
    %c1_39 = arith.constant 1 : index
    %c0_40 = arith.constant 0 : index
    %c0_41 = arith.constant 0 : index
    %52 = vector.load %arg9[%c1_39, %c0_40, %c0_41] : memref<4x32x32xbf16, #tpu.memory_space<vmem>>, vector<1x32x32xbf16>
    %53 = vector.shape_cast %52 : vector<1x32x32xbf16> to vector<32x32xbf16>
    %54 = vector.extract_strided_slice %48 {offsets = [0, 0], sizes = [32, 256], strides = [1, 1]} : vector<32x768xf32> to vector<32x256xf32>
    %55 = arith.truncf %54 : vector<32x256xf32> to vector<32x256xbf16>
    %cst_42 = arith.constant dense<0.000000e+00> : vector<32x256xf32>
    %56 = tpu.matmul %53, %55, %cst_42 {dimension_numbers = #tpu.dot_dimension_numbers<[1], [0], [0], [1], [0, 0, 1, 1], [], []>} : vector<32x32xbf16>, vector<32x256xbf16>, vector<32x256xf32> -> vector<32x256xf32>
    %c2_43 = arith.constant 2 : index
    %c0_44 = arith.constant 0 : index
    %c0_45 = arith.constant 0 : index
    %57 = vector.load %arg9[%c2_43, %c0_44, %c0_45] : memref<4x32x32xbf16, #tpu.memory_space<vmem>>, vector<1x32x32xbf16>
    %58 = vector.shape_cast %57 : vector<1x32x32xbf16> to vector<32x32xbf16>
    %59 = vector.extract_strided_slice %48 {offsets = [0, 256], sizes = [32, 256], strides = [1, 1]} : vector<32x768xf32> to vector<32x256xf32>
    %60 = arith.truncf %59 : vector<32x256xf32> to vector<32x256xbf16>
    %cst_46 = arith.constant dense<0.000000e+00> : vector<32x256xf32>
    %61 = tpu.matmul %58, %60, %cst_46 {dimension_numbers = #tpu.dot_dimension_numbers<[1], [0], [0], [1], [0, 0, 1, 1], [], []>} : vector<32x32xbf16>, vector<32x256xbf16>, vector<32x256xf32> -> vector<32x256xf32>
    %62 = arith.addf %56, %61 : vector<32x256xf32>
    %c3_47 = arith.constant 3 : index
    %c0_48 = arith.constant 0 : index
    %c0_49 = arith.constant 0 : index
    %63 = vector.load %arg9[%c3_47, %c0_48, %c0_49] : memref<4x32x32xbf16, #tpu.memory_space<vmem>>, vector<1x32x32xbf16>
    %64 = vector.shape_cast %63 : vector<1x32x32xbf16> to vector<32x32xbf16>
    %65 = vector.extract_strided_slice %48 {offsets = [0, 512], sizes = [32, 256], strides = [1, 1]} : vector<32x768xf32> to vector<32x256xf32>
    %66 = arith.truncf %65 : vector<32x256xf32> to vector<32x256xbf16>
    %cst_50 = arith.constant dense<0.000000e+00> : vector<32x256xf32>
    %67 = tpu.matmul %64, %66, %cst_50 {dimension_numbers = #tpu.dot_dimension_numbers<[1], [0], [0], [1], [0, 0, 1, 1], [], []>} : vector<32x32xbf16>, vector<32x256xbf16>, vector<32x256xf32> -> vector<32x256xf32>
    %68 = arith.addf %62, %67 : vector<32x256xf32>
    %69 = arith.addf %51, %68 : vector<32x256xf32>
    %c0_51 = arith.constant 0 : index
    %c0_52 = arith.constant 0 : index
    %70 = vector.load %arg10[%c0_51, %c0_52] : memref<32x1xf32, #tpu.memory_space<vmem>>, vector<32x1xf32>
    %71 = vector.broadcast %70 : vector<32x1xf32> to vector<32x256xf32>
    %72 = arith.addf %69, %71 : vector<32x256xf32>
    %cst_53 = arith.constant 0.000000e+00 : f32
    %73 = vector.broadcast %cst_53 : f32 to vector<32x256xf32>
    %74 = arith.maximumf %72, %73 : vector<32x256xf32>
    %c0_54 = arith.constant 0 : index
    %c0_55 = arith.constant 0 : index
    %75 = vector.load %arg11[%c0_54, %c0_55] : memref<32x32xbf16, #tpu.memory_space<vmem>>, vector<32x32xbf16>
    %76 = arith.truncf %74 : vector<32x256xf32> to vector<32x256xbf16>
    %cst_56 = arith.constant dense<0.000000e+00> : vector<32x256xf32>
    %77 = tpu.matmul %75, %76, %cst_56 {dimension_numbers = #tpu.dot_dimension_numbers<[1], [0], [0], [1], [0, 0, 1, 1], [], []>} : vector<32x32xbf16>, vector<32x256xbf16>, vector<32x256xf32> -> vector<32x256xf32>
    %c0_57 = arith.constant 0 : index
    %c0_58 = arith.constant 0 : index
    %78 = vector.load %arg12[%c0_57, %c0_58] : memref<32x1xf32, #tpu.memory_space<vmem>>, vector<32x1xf32>
    %79 = vector.broadcast %78 : vector<32x1xf32> to vector<32x256xf32>
    %80 = arith.addf %77, %79 : vector<32x256xf32>
    %81 = arith.addf %80, %45 : vector<32x256xf32>
    %cst_59 = arith.constant 0.000000e+00 : f32
    %82 = vector.broadcast %cst_59 : f32 to vector<32x256xf32>
    %83 = arith.maximumf %81, %82 : vector<32x256xf32>
    %c0_60 = arith.constant 0 : index
    %c0_61 = arith.constant 0 : index
    %84 = vector.load %arg13[%c0_60, %c0_61] : memref<32x256xf32, #tpu.memory_space<vmem>>, vector<32x256xf32>
    tpu.vector_store %arg13[%c0_60, %c0_61], %83 {strides = array<i32>} : memref<32x256xf32, #tpu.memory_space<vmem>>, vector<32x256xf32>,
    return
  }
}

</mosaic_0001>

<bundles_post_ra>
// kernel: up_forward.1
= control target key start
LH: loop header
LB: loop body
LE: loop exit
PB: predicated region body
PF: predicated region fallthrough
CT: control target
= control target key end

     0   :  { %18 = vsyncpa [#allocation3], 0  ;;  %s3324_s0 = inlined_call_operand.vmem [shape: f32[8,64], index: 0, kind: input, shape index: {}]   ;;  %s3325_s1 = inlined_call_operand.vmem [shape: f32[8,256], index: 1, kind: input, shape index: {}]   ;;  %s3326_s2 = inlined_call_operand.hbm [shape: bf16[256,768], index: 2, kind: input, shape index: {}]   ;;  %s3327_s3 = inlined_call_operand.vmem [shape: bf16[64,256], index: 3, kind: input, shape index: {}]   ;;  %s3328_s4 = inlined_call_operand.vmem [shape: bf16[4,8,8], index: 4, kind: input, shape index: {}]   ;;  %s3329_s5 = inlined_call_operand.vmem [shape: f32[8,1], index: 5, kind: input, shape index: {}]   ;;  %s3330_s6 = inlined_call_operand.vmem [shape: bf16[64,8], index: 6, kind: input, shape index: {}]   ;;  %s3331_s7 = inlined_call_operand.vmem [shape: bf16[64,8], index: 7, kind: input, shape index: {}]   ;;  %s3332_s8 = inlined_call_operand.vmem [shape: f32[64,1], index: 8, kind: input, shape index: {}]   ;;  %s3333_s9 = inlined_call_operand.vmem [shape: bf16[4,32,32], index: 9, kind: input, shape index: {}]   ;;  %s3334_s10 = inlined_call_operand.vmem [shape: f32[32,1], index: 10, kind: input, shape index: {}]   ;;  %s3335_s11 = inlined_call_operand.vmem [shape: bf16[32,32], index: 11, kind: input, shape index: {}]   ;;  %s3336_s12 = inlined_call_operand.vmem [shape: f32[32,1], index: 12, kind: input, shape index: {}]   ;;  %s3337_s13 = inlined_call_operand.hbm [shape: f32[32,256], index: 13, kind: output, shape index: {}]  }
   0x1   :  { %19 = vsyncpa [#allocation4], 0  ;;  %s28_s27 = sshll.u32 %s3326_s2, 4  ;;  %s2909_s28 = smov [#allocation2]   ;;  %s29_s27 = int_to_ptr.hbm [resolvable:$true] %s28_s27 }
   0x2   :  { %s30_s29 = sshll.u32 %s2909_s28, 4  ;;  %s2910_s30 = smov 384   ;;  %s31_s29 = int_to_ptr.vmem [resolvable:$true] %s30_s29 }
   0x3   :  { %s2911_s14 = smov 24  }
   0x4   :  { %36 = dma.hbm_to_vmem [thread:$0]  %s29_s27, 12288, %s31_s29, [#allocation3], %s2910_s30, %s2910_s30, %s2911_s14  }
   0x5   :  { %2905 = dma.done.wait [#allocation3], 12288  }
   0x6   :  { %2906 = vsyncadd [#allocation3], 4294955008  ;;  %v2076_v0 = vld [vmem:[%s3327_s3 + $0x30] sm:$0xf]  ;;  %v2708_v1 = vld [vmem:[%s3327_s3 + $0x34] sm:$0xf0] }
   0x7   :  { %v2707_v2 = vld [vmem:[%s3327_s3 + $0x34] sm:$0xf]  ;;  %v2077_v3 = vor.u32 %v2708_v1, %v2076_v0  ;;  %v2078_v4 = vld [vmem:[%s3327_s3 + $0x38] sm:$0xf0]  ;;  %v2068_v5 = vld [vmem:[%s3327_s3 + $0x20] sm:$0xf] }
   0x8   :  { %v2706_v6 = vld [vmem:[%s3327_s3 + $0x24] sm:$0xf0]  ;;  %v2081_v7 = vor.u32 %v2707_v2, %v2078_v4  ;;  %v2705_v8 = vld [vmem:[%s3327_s3 + $0x24] sm:$0xf]  ;;  %v2070_v9 = vld [vmem:[%s3327_s3 + $0x28] sm:$0xf0] }
   0x9   :  { %120 = vmatpush.bf16.msra.mxu2 %v2077_v3  ;;  %v2069_v10 = vor.u32 %v2706_v6, %v2068_v5  ;;  %v2073_v11 = vor.u32 %v2705_v8, %v2070_v9  ;;  %v2060_v12 = vld [vmem:[%s3327_s3 + $0x10] sm:$0xf]  ;;  %v2704_v13 = vld [vmem:[%s3327_s3 + $0x14] sm:$0xf0]  ;;  %v2703_v14 = vld [vmem:[%s3327_s3 + $0x14] sm:$0xf] }
   0xa   :  { %133 = vmatpush.bf16.msra.mxu3 %v2081_v7  ;;  %v2062_v15 = vld [vmem:[%s3327_s3 + $0x18] sm:$0xf0]  ;;  %v2052_v16 = vld [vmem:[%s3327_s3] sm:$0xf]  ;;  %v2702_v17 = vld [vmem:[%s3327_s3 + $0x4] sm:$0xf0]  ;;  %v2061_v18 = vor.u32 %v2704_v13, %v2060_v12 }
   0xb   :  { %v2701_v19 = vld [vmem:[%s3327_s3 + $0x4] sm:$0xf]  ;;  %v2054_v20 = vld [vmem:[%s3327_s3 + $0x8] sm:$0xf0]  ;;  %v2166_v21 = vld [vmem:[#allocation2 + $0x98] sm:$0xf]  ;;  %v2065_v24 = vor.u32 %v2703_v14, %v2062_v15  ;;  %v2053_v36 = vor.u32 %v2702_v17, %v2052_v16 }
   0xc   :  { %v2731_v22 = vld [vmem:[#allocation2 + $0xac] sm:$0xf0]  ;;  %v2728_v23 = vld [vmem:[#allocation2 + $0x9c] sm:$0xf]  ;;  %v2730_v26 = vld [vmem:[#allocation2 + $0xa4] sm:$0xf0]  ;;  %v2057_v40 = vor.u32 %v2701_v19, %v2054_v20 }
   0xd   :  { %121 = vmatpush.bf16.msra.mxu2 %v2069_v10  ;;  %v2158_v25 = vld [vmem:[#allocation2 + $0x90] sm:$0xf]  ;;  %v2167_v27 = vor.u32 %v2731_v22, %v2166_v21  ;;  %v2168_v28 = vld [vmem:[#allocation2 + $0xb0] sm:$0xf0]  ;;  %v2160_v30 = vld [vmem:[#allocation2 + $0xa8] sm:$0xf0] }
   0xe   :  { %134 = vmatpush.bf16.msra.mxu3 %v2073_v11  ;;  %v2727_v29 = vld [vmem:[#allocation2 + $0x94] sm:$0xf]  ;;  %v2171_v31 = vor.u32 %v2728_v23, %v2168_v28  ;;  %v2142_v32 = vld [vmem:[#allocation2 + $0x68] sm:$0xf]  ;;  %v2725_v33 = vld [vmem:[#allocation2 + $0x7c] sm:$0xf0]  ;;  %v2159_v41 = vor.u32 %v2730_v26, %v2158_v25 }
   0xf   :  { %316 = vmatpush.bf16.msra.mxu0 %v2167_v27  ;;  %v2722_v34 = vld [vmem:[#allocation2 + $0x6c] sm:$0xf]  ;;  %v2144_v35 = vld [vmem:[#allocation2 + $0x80] sm:$0xf0]  ;;  %v2143_v38 = vor.u32 %v2725_v33, %v2142_v32  ;;  %v2134_v42 = vld [vmem:[#allocation2 + $0x60] sm:$0xf]  ;;  %v2163_v45 = vor.u32 %v2727_v29, %v2160_v30 }
  0x10   :  { %v62_v37 = vld [vmem:[%s3324_s0] sm:$0xff]  ;;  %329 = vmatpush.bf16.msra.mxu1 %v2171_v31  ;;  %v2147_v39 = vor.u32 %v2722_v34, %v2144_v35  ;;  %v2118_v43 = vld [vmem:[#allocation2 + $0x38] sm:$0xf]  ;;  %v2719_v44 = vld [vmem:[#allocation2 + $0x4c] sm:$0xf0]  ;;  %vm112_vm0 = vcmask 523264  }
  0x11   :  { %122 = vmatpush.bf16.msra.mxu2 %v2061_v18  ;;  %v2724_v46 = vld [vmem:[#allocation2 + $0x74] sm:$0xf0]  ;;  %v2716_v47 = vld [vmem:[#allocation2 + $0x3c] sm:$0xf]  ;;  %v2120_v48 = vld [vmem:[#allocation2 + $0x50] sm:$0xf0]  ;;  %v3040_v49 = vpack.c.bf16 %v62_v37, %v62_v37  ;;  %v2119_v52 = vor.u32 %v2719_v44, %v2118_v43 }
  0x12   :  { %135 = vmatpush.bf16.msra.mxu3 %v2065_v24  ;;  %v2721_v50 = vld [vmem:[#allocation2 + $0x64] sm:$0xf]  ;;  %v2136_v51 = vld [vmem:[#allocation2 + $0x78] sm:$0xf0]  ;;  %v2123_v53 = vor.u32 %v2716_v47, %v2120_v48  ;;  %v2094_v54 = vld [vmem:[#allocation2 + $0x8] sm:$0xf]  ;;  %v2135_v56 = vor.u32 %v2724_v46, %v2134_v42 }
  0x13   :  { %317 = vmatpush.bf16.msra.mxu0 %v2143_v38  ;;  %v2713_v55 = vld [vmem:[#allocation2 + $0x1c] sm:$0xf0]  ;;  %v2710_v57 = vld [vmem:[#allocation2 + $0xc] sm:$0xf]  ;;  %v2096_v58 = vld [vmem:[#allocation2 + $0x20] sm:$0xf0]  ;;  %v2139_v59 = vor.u32 %v2721_v50, %v2136_v51 }
  0x14   :  { %330 = vmatpush.bf16.msra.mxu1 %v2147_v39  ;;  %v2110_v60 = vld [vmem:[#allocation2 + $0x30] sm:$0xf]  ;;  %v2718_v61 = vld [vmem:[#allocation2 + $0x44] sm:$0xf0]  ;;  %v2715_v62 = vld [vmem:[#allocation2 + $0x34] sm:$0xf]  ;;  %v2095_v0 = vor.u32 %v2713_v55, %v2094_v54  ;;  %v2099_v1 = vor.u32 %v2710_v57, %v2096_v58 }
  0x15   :  { %123 = vmatpush.bf16.msra.mxu2 %v2053_v36  ;;  %v2112_v63 = vld [vmem:[#allocation2 + $0x48] sm:$0xf0]  ;;  %v2111_v2 = vor.u32 %v2718_v61, %v2110_v60  ;;  %v2086_v4 = vld [vmem:[#allocation2] sm:$0xf]  ;;  %v2712_v5 = vld [vmem:[#allocation2 + $0x14] sm:$0xf0] }
  0x16   :  { %136 = vmatpush.bf16.msra.mxu3 %v2057_v40  ;;  %v2115_v3 = vor.u32 %v2715_v62, %v2112_v63  ;;  %v2709_v6 = vld [vmem:[#allocation2 + $0x4] sm:$0xf]  ;;  %v2088_v7 = vld [vmem:[#allocation2 + $0x18] sm:$0xf0]  ;;  %v2174_v8 = vld [vmem:[#allocation2 + $0xa0] sm:$0xf]  ;;  %v2087_v12 = vor.u32 %v2712_v5, %v2086_v4 }
  0x17   :  { %318 = vmatpush.bf16.msra.mxu0 %v2119_v52  ;;  %v2732_v9 = vld [vmem:[#allocation2 + $0xb4] sm:$0xf0]  ;;  %v2729_v10 = vld [vmem:[#allocation2 + $0xa4] sm:$0xf]  ;;  %v2176_v11 = vld [vmem:[#allocation2 + $0xb8] sm:$0xf0]  ;;  %v2091_v13 = vor.u32 %v2709_v6, %v2088_v7 }
  0x18   :  { %2082 = vmatmul.msk.bf16.vlgmr.msra.gmra.mxu2 %vm112_vm0, %v3040_v49  ;;  %331 = vmatpush.bf16.msra.mxu1 %v2123_v53  ;;  %v2175_v14 = vor.u32 %v2732_v9, %v2174_v8  ;;  %v2179_v15 = vor.u32 %v2729_v10, %v2176_v11  ;;  %v2150_v16 = vld [vmem:[#allocation2 + $0x70] sm:$0xf]  ;;  %v2726_v17 = vld [vmem:[#allocation2 + $0x84] sm:$0xf0]  ;;  %v2723_v18 = vld [vmem:[#allocation2 + $0x74] sm:$0xf] }
  0x19   :  { %290 = vmatpush.bf16.msrb.mxu2 %v2159_v41  ;;  %2083 = vmatmul.msk.bf16.vlgmr.msra.gmra.mxu3 %vm112_vm0, %v3040_v49  ;;  %v2152_v19 = vld [vmem:[#allocation2 + $0x88] sm:$0xf0]  ;;  %v2151_v20 = vor.u32 %v2726_v17, %v2150_v16  ;;  %v2126_v22 = vld [vmem:[#allocation2 + $0x40] sm:$0xf]  ;;  %v2720_v23 = vld [vmem:[#allocation2 + $0x54] sm:$0xf0] }
  0x1a   :  { %303 = vmatpush.bf16.msrb.mxu3 %v2163_v45  ;;  %v2155_v21 = vor.u32 %v2723_v18, %v2152_v19  ;;  %v2717_v24 = vld [vmem:[#allocation2 + $0x44] sm:$0xf]  ;;  %v2128_v25 = vld [vmem:[#allocation2 + $0x58] sm:$0xf0]  ;;  %v2127_v26 = vor.u32 %v2720_v23, %v2126_v22  ;;  %v2102_v28 = vld [vmem:[#allocation2 + $0x10] sm:$0xf] }
  0x1b   :  { %319 = vmatpush.bf16.msra.mxu0 %v2095_v0  ;;  %v2131_v27 = vor.u32 %v2717_v24, %v2128_v25  ;;  %v2714_v29 = vld [vmem:[#allocation2 + $0x24] sm:$0xf0]  ;;  %v2711_v30 = vld [vmem:[#allocation2 + $0x14] sm:$0xf]  ;;  %v2104_v31 = vld [vmem:[#allocation2 + $0x28] sm:$0xf0] }
  0x1c   :  { %332 = vmatpush.bf16.msra.mxu1 %v2099_v1  ;;  %v2103_v32 = vor.u32 %v2714_v29, %v2102_v28  ;;  %v2107_v33 = vor.u32 %v2711_v30, %v2104_v31  ;;  %v2912_v34 = vmov 0   ;;  %v523_v35 = vld [vmem:[%s3329_s5] sm:$0xff]  ;;  %v1884_v42 = vld [vmem:[%s3334_s10 + $0x18] sm:$0xff]  ;;  %vm379_vm1 = vcmask 1043456   ;;  %v2187_v46 = vld [vmem:[%s3328_s4 + $0x8] sm:$0xf] }
  0x1d   :  { %291 = vmatpush.bf16.msrb.mxu2 %v2135_v56  ;;  %2854 = vset.pattern.permute.xlu0 %v2912_v34  ;;  %v745_v36 = vld [vmem:[%s3332_s8] sm:$0xff]  ;;  %vm375_vm2 = vcmask 64512   ;;  %v752_v54 = vld [vmem:[%s3332_s8 + $0x38] sm:$0xff]  ;;  %v1931_v1 = vld [vmem:[%s3336_s12 + $0x10] sm:$0xff]  ;;  %vm1657_vm3 = vcmask 261120   ;;  %s2037_s19 = sshll.u32 %s3337_s13, 4  ;;  %s2038_s19 = int_to_ptr.hbm [resolvable:$true] %s2037_s19 }
  0x1e   :  { %304 = vmatpush.bf16.msrb.mxu3 %v2139_v59  ;;  %2182 = vmatmul.msk.bf16.vlgmr.msra.gmra.mxu0 %vm112_vm0, %v3040_v49  ;;  %v749_v50 = vld [vmem:[%s3332_s8 + $0x20] sm:$0xff]  ;;  %v2192_v9 = vld [vmem:[%s3328_s4 + $0xc] sm:$0xf]  ;;  %v747_v23 = vld [vmem:[%s3332_s8 + $0x10] sm:$0xff]  ;;  %s2914_s20 = smov 256  }
  0x1f   :  { %2183 = vmatmul.msk.bf16.vlgmr.msra.gmra.mxu1 %vm112_vm0, %v3040_v49  ;;  %2855 = vset.pattern.permute.xlu1 %v2912_v34  ;;  %v2186_v62 = vld [vmem:[%s3328_s4 + $0x4] sm:$0xf]  ;;  %v364_v10 = vld [vmem:[%s3328_s4] sm:$0xf]  ;;  %v750_v28 = vld [vmem:[%s3332_s8 + $0x28] sm:$0xff] }
  0x20   :  { %526 = vperm.xlu0 %2854, %v523_v35   ;;  %2856 = vset.pattern.permute.xlu2 %v2912_v34  ;;  %v2733_v22 = vld [vmem:[%s3330_s6] sm:$0xff] }
  0x21   :  { %292 = vmatpush.bf16.msrb.mxu2 %v2111_v2  ;;  %v1929_v31 = vld [vmem:[%s3336_s12] sm:$0xff] }
  0x22   :  { %305 = vmatpush.bf16.msrb.mxu3 %v2115_v3 }
  0x25   :  { %293 = vmatpush.bf16.msrb.mxu2 %v2087_v12 }
  0x26   :  { %306 = vmatpush.bf16.msrb.mxu3 %v2091_v13  ;;  %v746_v13 = vld [vmem:[%s3332_s8 + $0x8] sm:$0xff] }
  0x27   :  { %760 = vperm.xlu1 %2855, %v746_v13  }
  0x28   :  { %2180 = vmatmul.msk.bf16.vlgmr.msrb.gmra.mxu2 %vm112_vm0, %v3040_v49  ;;  %755 = vperm.xlu0 %2854, %v745_v36   ;;  %v1932_v36 = vld [vmem:[%s3336_s12 + $0x18] sm:$0xff] }
  0x29   :  { %342 = vmatpush.bf16.msra.mxu2 %v2175_v14  ;;  %2181 = vmatmul.msk.bf16.vlgmr.msrb.gmra.mxu3 %vm112_vm0, %v3040_v49  ;;  %v539_v14 = vld [vmem:[%s3325_s1] sm:$0xff] }
  0x2a   :  { %355 = vmatpush.bf16.msra.mxu3 %v2179_v15  ;;  %v540_v15 = vld [vmem:[%s3325_s1 + $0x8] sm:$0xff]  ;;  %v541_v16 = vpack.c.bf16 %v539_v14, %v539_v14  ;;  %v2740_v14 = vld [vmem:[%s3331_s7 + $0x18] sm:$0xff] }
  0x2b   :  { %v542_v17 = vpack.c.bf16 %v540_v15, %v540_v15  ;;  %v2777_v15 = vld [vmem:[#allocation2 + $0x124] sm:$0xf] }
  0x2c   :  { %v682_v18 = vsel %vm379_vm1, %v541_v16, 0  ;;  %v2393_v16 = vld [vmem:[#allocation2 + $0x138] sm:$0xf0] }
  0x2d   :  { %343 = vmatpush.bf16.msra.mxu2 %v2151_v20  ;;  %v685_v19 = vsel %vm379_vm1, %v542_v17, 0  ;;  %v2825_v17 = vld [vmem:[#allocation2 + $0x2a4] sm:$0xf] }
  0x2e   :  { %356 = vmatpush.bf16.msra.mxu3 %v2155_v21 }
  0x2f   :  { %765 = vperm.xlu1 %2855, %v747_v23  }
  0x30   :  { %1902 = vperm.xlu0 %2854, %v1884_v42  }
  0x31   :  { %344 = vmatpush.bf16.msra.mxu2 %v2127_v26  ;;  %v1881_v26 = vld [vmem:[%s3334_s10] sm:$0xff] }
  0x32   :  { %357 = vmatpush.bf16.msra.mxu3 %v2131_v27  ;;  %v2734_v27 = vld [vmem:[%s3330_s6 + $0x8] sm:$0xff] }
  0x35   :  { %345 = vmatpush.bf16.msra.mxu2 %v2103_v32 }
  0x36   :  { %358 = vmatpush.bf16.msra.mxu3 %v2107_v33 }
  0x37   :  { %1887 = vperm.xlu1 %2855, %v1881_v26  }
  0x38   :  { %2184 = vmatmul.msk.bf16.vlgmr.msra.gmra.mxu2 %vm112_vm0, %v3040_v49  ;;  %775 = vperm.xlu0 %2854, %v749_v50  }
  0x39   :  { %2185 = vmatmul.msk.bf16.vlgmr.msra.gmra.mxu3 %vm112_vm0, %v3040_v49 }
  0x3f   :  { %780 = vperm.xlu1 %2855, %v750_v28   ;;  %v2774_v28 = vld [vmem:[#allocation2 + $0x104] sm:$0xf0] }
  0x40   :  { %790 = vperm.xlu0 %2854, %v752_v54  }
  0x47   :  { %1935 = vperm.xlu1 %2855, %v1929_v31   ;;  %v2822_v31 = vld [vmem:[#allocation2 + $0x284] sm:$0xf0] }
  0x48   :  { %1945 = vperm.xlu0 %2854, %v1931_v1   ;;  %v2739_v1 = vld [vmem:[%s3331_s7 + $0x10] sm:$0xff] }
  0x4f   :  { %1950 = vperm.xlu1 %2855, %v1932_v36   ;;  %v2819_v36 = vld [vmem:[#allocation2 + $0x274] sm:$0xf] }
  0x9b   :  { %v125_v37 = vpop.f32.mrf.mxu2  ;;  %v321_v39 = vpop.f32.mrf.mxu0 }
  0x9c   :  { %v138_v38 = vpop.f32.mrf.mxu3  ;;  %v373_v40 = vpack.c.bf16 %v321_v39, %v321_v39  ;;  %v334_v41 = vpop.f32.mrf.mxu1  ;;  %v365_v52 = vpack.c.bf16 %v125_v37, %v125_v37  ;;  %v2735_v37 = vld [vmem:[%s3330_s6 + $0x10] sm:$0xff] }
  0x9d   :  { %v374_v43 = vpack.c.bf16 %v334_v41, %v334_v41  ;;  %v366_v55 = vpack.c.bf16 %v138_v38, %v138_v38  ;;  %v748_v38 = vld [vmem:[%s3332_s8 + $0x18] sm:$0xff] }
  0x9e   :  { %v381_v44 = vsel %vm379_vm1, %v373_v40, 0  ;;  %v492_v60 = vsel %vm379_vm1, %v365_v52, 0  ;;  %770 = vperm.xlu2 %2856, %v748_v38   ;;  %v2343_v38 = vld [vmem:[#allocation2 + $0xc0] sm:$0xf] }
  0x9f   :  { %393 = vmatpush.bf16.msrb.mxu0 %v381_v44  ;;  %v384_v45 = vsel %vm379_vm1, %v374_v43, 0  ;;  %v495_v63 = vsel %vm379_vm1, %v366_v55, 0  ;;  %v2737_v55 = vld [vmem:[%s3331_s7] sm:$0xff] }
  0xa0   :  { %406 = vmatpush.bf16.msrb.mxu1 %v384_v45 }
  0xa2   :  { %2188 = vmatmul.msk.bf16.vlgmr.msrb.gmra.mxu0 %vm375_vm2, %v2187_v46 }
  0xa3   :  { %v127_v47 = vpop.f32.mrf.mxu2  ;;  %2189 = vmatmul.msk.bf16.vlgmr.msrb.gmra.mxu1 %vm375_vm2, %v2187_v46  ;;  %v323_v49 = vpop.f32.mrf.mxu0 }
  0xa4   :  { %v140_v48 = vpop.f32.mrf.mxu3  ;;  %v336_v51 = vpop.f32.mrf.mxu1 }
  0xa5   :  { %v527_v46 = vpop.permute.xlu0 %526 }
  0xab   :  { %v295_v53 = vpop.f32.mrf.mxu2 }
  0xac   :  { %v369_v56 = vpack.c.bf16 %v295_v53, %v295_v53  ;;  %v308_v57 = vpop.f32.mrf.mxu3 }
  0xad   :  { %v370_v58 = vpack.c.bf16 %v308_v57, %v308_v57 }
  0xae   :  { %v416_v59 = vsel %vm379_vm1, %v369_v56, 0 }
  0xaf   :  { %v419_v61 = vsel %vm379_vm1, %v370_v58, 0  ;;  %428 = vmatpush.bf16.msrb.mxu2 %v416_v59  ;;  %v1883_v59 = vld [vmem:[%s3334_s10 + $0x10] sm:$0xff] }
  0xb0   :  { %441 = vmatpush.bf16.msrb.mxu3 %v419_v61  ;;  %1897 = vperm.xlu2 %2856, %v1883_v59   ;;  %v1882_v61 = vld [vmem:[%s3334_s10 + $0x8] sm:$0xff]  ;;  %s2915_s10 = smov 16  }
  0xb2   :  { %2190 = vmatmul.msk.bf16.vlgmr.msrb.gmra.mxu2 %vm375_vm2, %v2186_v62 }
  0xb3   :  { %504 = vmatpush.bf16.msra.mxu2 %v492_v60  ;;  %2191 = vmatmul.msk.bf16.vlgmr.msrb.gmra.mxu3 %vm375_vm2, %v2186_v62  ;;  %v297_v0 = vpop.f32.mrf.mxu2  ;;  %v2736_v60 = vld [vmem:[%s3330_s6 + $0x18] sm:$0xff]  ;;  %v2738_v62 = vld [vmem:[%s3331_s7 + $0x8] sm:$0xff] }
  0xb4   :  { %517 = vmatpush.bf16.msra.mxu3 %v495_v63  ;;  %v310_v2 = vpop.f32.mrf.mxu3  ;;  %v751_v63 = vld [vmem:[%s3332_s8 + $0x30] sm:$0xff]  ;;  %v1930_v0 = vld [vmem:[%s3336_s12 + $0x8] sm:$0xff] }
  0xb5   :  { %v2783_v2 = vld [vmem:[#allocation2 + $0x154] sm:$0xf] }
  0xb7   :  { %694 = vmatpush.bf16.msrb.mxu2 %v682_v18  ;;  %v2396_v18 = vor.u32 %v2777_v15, %v2393_v16  ;;  %v2798_v15 = vld [vmem:[#allocation2 + $0x1c4] sm:$0xf0]  ;;  %v2747_v16 = vld [vmem:[#allocation2 + $0x34] sm:$0xf] }
  0xb8   :  { %723 = vmatpush.bf16.msrb.mxu3 %v685_v19  ;;  %1892 = vperm.xlu2 %2856, %v1882_v61   ;;  %v2585_v19 = vld [vmem:[#allocation2 + $0x2b8] sm:$0xf0]  ;;  %v2513_v61 = vld [vmem:[#allocation2 + $0x228] sm:$0xf0] }
  0xbb   :  { %v347_v3 = vpop.f32.mrf.mxu2 }
  0xbc   :  { %v449_v4 = vpack.c.bf16 %v347_v3, %v347_v3  ;;  %v360_v5 = vpop.f32.mrf.mxu3  ;;  %v2417_v3 = vld [vmem:[#allocation2 + $0x168] sm:$0xf0] }
  0xbd   :  { %v450_v6 = vpack.c.bf16 %v360_v5, %v360_v5  ;;  %v2420_v5 = vor.u32 %v2783_v2, %v2417_v3  ;;  %v2804_v3 = vld [vmem:[#allocation2 + $0x1f4] sm:$0xf0] }
  0xbe   :  { %v455_v7 = vsel %vm379_vm1, %v449_v4, 0  ;;  %v2831_v4 = vld [vmem:[#allocation2 + $0x2d4] sm:$0xf] }
  0xbf   :  { %v458_v8 = vsel %vm379_vm1, %v450_v6, 0  ;;  %467 = vmatpush.bf16.msra.mxu0 %v455_v7  ;;  %v2609_v6 = vld [vmem:[#allocation2 + $0x2e8] sm:$0xf0]  ;;  %v2415_v7 = vld [vmem:[#allocation2 + $0x150] sm:$0xf] }
  0xc0   :  { %480 = vmatpush.bf16.msra.mxu1 %v458_v8  ;;  %785 = vperm.xlu2 %2856, %v751_v63   ;;  %v2786_v8 = vld [vmem:[#allocation2 + $0x164] sm:$0xf0]  ;;  %v2295_v63 = vld [vmem:[#allocation2 + $0x60] sm:$0xf] }
  0xc2   :  { %2193 = vmatmul.msk.bf16.vlgmr.msra.gmra.mxu0 %vm375_vm2, %v2192_v9  ;;  %2195 = vmatmul.msk.bf16.vlgmr.msra.gmra.mxu2 %vm375_vm2, %v364_v10 }
  0xc3   :  { %2194 = vmatmul.msk.bf16.vlgmr.msra.gmra.mxu1 %vm375_vm2, %v2192_v9  ;;  %2196 = vmatmul.msk.bf16.vlgmr.msra.gmra.mxu3 %vm375_vm2, %v364_v10  ;;  %v349_v11 = vpop.f32.mrf.mxu2  ;;  %v2612_v9 = vor.u32 %v2831_v4, %v2609_v6  ;;  %v2416_v10 = vor.u32 %v2786_v8, %v2415_v7  ;;  %v2753_v4 = vld [vmem:[#allocation2 + $0x64] sm:$0xf] }
  0xc4   :  { %v362_v12 = vpop.f32.mrf.mxu3  ;;  %v2607_v11 = vld [vmem:[#allocation2 + $0x2d0] sm:$0xf]  ;;  %1435 = vmatpush.bf16.msra.mxu2 %v2420_v5  ;;  %v2297_v5 = vld [vmem:[#allocation2 + $0x78] sm:$0xf0]  ;;  %v2801_v8 = vld [vmem:[#allocation2 + $0x1e4] sm:$0xf] }
  0xc5   :  { %v2834_v12 = vld [vmem:[#allocation2 + $0x2e4] sm:$0xf0]  ;;  %1454 = vmatpush.bf16.msra.mxu3 %v2612_v9  ;;  %v2300_v7 = vor.u32 %v2753_v4, %v2297_v5  ;;  %v2489_v9 = vld [vmem:[#allocation2 + $0x1f8] sm:$0xf0] }
  0xc6   :  { %v2608_v13 = vor.u32 %v2834_v12, %v2607_v11  ;;  %v2271_v11 = vld [vmem:[#allocation2 + $0x30] sm:$0xf]  ;;  %v2750_v12 = vld [vmem:[#allocation2 + $0x44] sm:$0xf0] }
  0xc8   :  { %1940 = vperm.xlu2 %2856, %v1930_v0   ;;  %1436 = vmatpush.bf16.msra.mxu2 %v2396_v18  ;;  %v2756_v0 = vld [vmem:[#allocation2 + $0x74] sm:$0xf0] }
  0xc9   :  { %v2296_v2 = vor.u32 %v2756_v0, %v2295_v63  ;;  %v2567_v63 = vld [vmem:[#allocation2 + $0x278] sm:$0xf] }
  0xd2   :  { %2237 = vmatmul.msk.bf16.vlgmr.msrb.gmra.mxu2 %vm375_vm2, %v2733_v22 }
  0xd3   :  { %2241 = vmatmul.msk.bf16.vlgmr.msrb.gmra.mxu3 %vm375_vm2, %v2733_v22  ;;  %v2588_v22 = vor.u32 %v2825_v17, %v2585_v19  ;;  %v2273_v17 = vld [vmem:[#allocation2 + $0x48] sm:$0xf0] }
  0xd4   :  { %v2276_v19 = vor.u32 %v2747_v16, %v2273_v17 }
  0xd5   :  { %1455 = vmatpush.bf16.msra.mxu3 %v2588_v22 }
  0xe2   :  { %2238 = vmatmul.msk.bf16.gmra.mxu2 %vm375_vm2, %v2734_v27 }
  0xe3   :  { %2242 = vmatmul.msk.bf16.gmra.mxu3 %vm375_vm2, %v2734_v27  ;;  %v2367_v27 = vld [vmem:[#allocation2 + $0xf0] sm:$0xf] }
  0xf2   :  { %2239 = vmatmul.msk.bf16.gmra.mxu2 %vm375_vm2, %v2735_v37 }
  0xf3   :  { %2243 = vmatmul.msk.bf16.gmra.mxu3 %vm375_vm2, %v2735_v37  ;;  %v2561_v37 = vld [vmem:[#allocation2 + $0x288] sm:$0xf0] }
 0x102   :  { %2240 = vmatmul.msk.bf16.gmra.mxu2 %vm375_vm2, %v2736_v60 }
 0x103   :  { %2244 = vmatmul.msk.bf16.gmra.mxu3 %vm375_vm2, %v2736_v60  ;;  %v2807_v60 = vld [vmem:[#allocation2 + $0x214] sm:$0xf] }
 0x11f   :  { %v395_v20 = vpop.f32.mrf.mxu0 }
 0x120   :  { %v408_v21 = vpop.f32.mrf.mxu1 }
 0x127   :  { %v397_v24 = vpop.f32.mrf.mxu0 }
 0x128   :  { %v410_v25 = vpop.f32.mrf.mxu1  ;;  %v2583_v24 = vld [vmem:[#allocation2 + $0x2a0] sm:$0xf] }
 0x129   :  { %v2828_v25 = vld [vmem:[#allocation2 + $0x2b4] sm:$0xf0] }
 0x12a   :  { %v2584_v26 = vor.u32 %v2828_v25, %v2583_v24  ;;  %v2744_v24 = vld [vmem:[#allocation2 + $0x14] sm:$0xf0]  ;;  %v2439_v25 = vld [vmem:[#allocation2 + $0x180] sm:$0xf] }
 0x135   :  { %v430_v29 = vpop.f32.mrf.mxu2 }
 0x136   :  { %v443_v30 = vpop.f32.mrf.mxu3  ;;  %v431_v39 = vadd.f32 %v430_v29, %v395_v20  ;;  %v2391_v20 = vld [vmem:[#allocation2 + $0x120] sm:$0xf]  ;;  %v2559_v29 = vld [vmem:[#allocation2 + $0x270] sm:$0xf] }
 0x137   :  { %v444_v40 = vadd.f32 %v443_v30, %v408_v21  ;;  %v2780_v21 = vld [vmem:[#allocation2 + $0x134] sm:$0xf0]  ;;  %v2368_v30 = vor.u32 %v2774_v28, %v2367_v27  ;;  %v2741_v28 = vld [vmem:[#allocation2 + $0x4] sm:$0xf] }
 0x138   :  { %v2392_v23 = vor.u32 %v2780_v21, %v2391_v20  ;;  %v2795_v20 = vld [vmem:[#allocation2 + $0x1b4] sm:$0xf]  ;;  %v2465_v21 = vld [vmem:[#allocation2 + $0x1c8] sm:$0xf0]  ;;  %v2792_v27 = vld [vmem:[#allocation2 + $0x194] sm:$0xf0] }
 0x139   :  { %v2468_v22 = vor.u32 %v2795_v20, %v2465_v21  ;;  %v2545_v20 = vld [vmem:[#allocation2 + $0x260] sm:$0xf0] }
 0x13d   :  { %v432_v32 = vpop.f32.mrf.mxu2 }
 0x13e   :  { %v445_v33 = vpop.f32.mrf.mxu3  ;;  %v2771_v32 = vld [vmem:[#allocation2 + $0xf4] sm:$0xf] }
 0x13f   :  { %v469_v34 = vpop.f32.mrf.mxu0  ;;  %v2369_v33 = vld [vmem:[#allocation2 + $0x108] sm:$0xf0] }
 0x140   :  { %v482_v35 = vpop.f32.mrf.mxu1  ;;  %v486_v41 = vadd.f32 %v469_v34, %v431_v39  ;;  %v2560_v34 = vor.u32 %v2822_v31, %v2559_v29  ;;  %v2564_v39 = vor.u32 %v2819_v36, %v2561_v37  ;;  %v2249_v29 = vld [vmem:[#allocation2 + $0x18] sm:$0xf0]  ;;  %v2787_v36 = vld [vmem:[#allocation2 + $0x16c] sm:$0xf0]  ;;  %v2615_v37 = vld [vmem:[#allocation2 + $0x2d8] sm:$0xf] }
 0x141   :  { %v487_v42 = vadd.f32 %v482_v35, %v444_v40  ;;  %v2372_v35 = vor.u32 %v2771_v32, %v2369_v33  ;;  %v2768_v40 = vld [vmem:[#allocation2 + $0xd4] sm:$0xf0]  ;;  %v2252_v31 = vor.u32 %v2741_v28, %v2249_v29  ;;  %v2789_v32 = vld [vmem:[#allocation2 + $0x184] sm:$0xf]  ;;  %v2441_v33 = vld [vmem:[#allocation2 + $0x198] sm:$0xf0] }
 0x142   :  { %1456 = vmatpush.bf16.msra.mxu3 %v2564_v39  ;;  %v2835_v39 = vld [vmem:[#allocation2 + $0x2ec] sm:$0xf0] }
 0x143   :  { %1437 = vmatpush.bf16.msra.mxu2 %v2372_v35  ;;  %v2423_v35 = vld [vmem:[#allocation2 + $0x158] sm:$0xf]  ;;  %v2811_v29 = vld [vmem:[#allocation2 + $0x22c] sm:$0xf0] }
 0x145   :  { %v506_v43 = vpop.f32.mrf.mxu2 }
 0x146   :  { %v507_v44 = vadd.f32 %v506_v43, %v486_v41  ;;  %v519_v45 = vpop.f32.mrf.mxu3  ;;  %v2535_v41 = vld [vmem:[#allocation2 + $0x240] sm:$0xf]  ;;  %v2344_v43 = vor.u32 %v2768_v40, %v2343_v38  ;;  %v2424_v38 = vor.u32 %v2787_v36, %v2423_v35  ;;  %v2784_v40 = vld [vmem:[#allocation2 + $0x15c] sm:$0xf]  ;;  %v2521_v35 = vld [vmem:[#allocation2 + $0x230] sm:$0xf0] }
 0x147   :  { %v520_v47 = vadd.f32 %v519_v45, %v487_v42  ;;  %v471_v48 = vpop.f32.mrf.mxu0  ;;  %v2816_v42 = vld [vmem:[#allocation2 + $0x254] sm:$0xf0]  ;;  %v2765_v45 = vld [vmem:[#allocation2 + $0xc4] sm:$0xf] }
 0x148   :  { %v529_v49 = vadd.f32 %v527_v46, %v507_v44  ;;  %v484_v50 = vpop.f32.mrf.mxu1  ;;  %v2536_v44 = vor.u32 %v2816_v42, %v2535_v41  ;;  %v2425_v41 = vld [vmem:[#allocation2 + $0x170] sm:$0xf0]  ;;  %v2616_v42 = vor.u32 %v2835_v39, %v2615_v37  ;;  %v2303_v37 = vld [vmem:[#allocation2 + $0x68] sm:$0xf] }
 0x149   :  { %v530_v51 = vadd.f32 %v527_v46, %v520_v47  ;;  %v2345_v46 = vld [vmem:[#allocation2 + $0xd8] sm:$0xf0]  ;;  %v2813_v47 = vld [vmem:[#allocation2 + $0x244] sm:$0xf]  ;;  %v2495_v39 = vld [vmem:[#allocation2 + $0x1e8] sm:$0xf] }
 0x14a   :  { %v551_v52 = vpack.c.bf16 %v529_v49, %v529_v49  ;;  %v2348_v48 = vor.u32 %v2765_v45, %v2345_v46  ;;  %v2537_v49 = vld [vmem:[#allocation2 + $0x258] sm:$0xf0]  ;;  %v2617_v45 = vld [vmem:[#allocation2 + $0x2f0] sm:$0xf0] }
 0x14b   :  { %v552_v53 = vpack.c.bf16 %v530_v51, %v530_v51  ;;  %v2540_v50 = vor.u32 %v2813_v47, %v2537_v49  ;;  %v2319_v51 = vld [vmem:[#allocation2 + $0x90] sm:$0xf]  ;;  %v2781_v49 = vld [vmem:[#allocation2 + $0x13c] sm:$0xf0] }
 0x14c   :  { %v586_v54 = vsel %vm379_vm1, %v551_v52, 0  ;;  %1438 = vmatpush.bf16.msra.mxu2 %v2348_v48  ;;  %v2762_v52 = vld [vmem:[#allocation2 + $0xa4] sm:$0xf0] }
 0x14d   :  { %v508_v56 = vpop.f32.mrf.mxu2  ;;  %598 = vmatpush.bf16.msrb.mxu0 %v586_v54  ;;  %v589_v57 = vsel %vm379_vm1, %v552_v53, 0  ;;  %1457 = vmatpush.bf16.msra.mxu3 %v2540_v50  ;;  %v2511_v53 = vld [vmem:[#allocation2 + $0x210] sm:$0xf]  ;;  %v2320_v54 = vor.u32 %v2762_v52, %v2319_v51  ;;  %v2399_v48 = vld [vmem:[#allocation2 + $0x128] sm:$0xf] }
 0x14e   :  { %v521_v58 = vpop.f32.mrf.mxu3  ;;  %627 = vmatpush.bf16.msrb.mxu1 %v589_v57  ;;  %v2759_v56 = vld [vmem:[#allocation2 + $0x94] sm:$0xf]  ;;  %v2321_v57 = vld [vmem:[#allocation2 + $0xa8] sm:$0xf0]  ;;  %v2591_v50 = vld [vmem:[#allocation2 + $0x2a8] sm:$0xf]  ;;  %v2400_v52 = vor.u32 %v2781_v49, %v2399_v48  ;;  %v756_v49 = vpop.permute.xlu0 %755 }
 0x14f   :  { %v2324_v59 = vor.u32 %v2759_v56, %v2321_v57  ;;  %v2802_v48 = vld [vmem:[#allocation2 + $0x1ec] sm:$0xf] }
 0x150   :  { %2213 = vmatmul.msk.bf16.vlgmr.msrb.gmra.mxu0 %vm375_vm2, %v2737_v55 }
 0x151   :  { %2217 = vmatmul.msk.bf16.vlgmr.msrb.gmra.mxu1 %vm375_vm2, %v2737_v55  ;;  %1397 = vmatpush.bf16.msra.mxu0 %v2416_v10  ;;  %v2810_v55 = vld [vmem:[#allocation2 + $0x224] sm:$0xf0]  ;;  %v2492_v10 = vor.u32 %v2801_v8, %v2489_v9 }
 0x152   :  { %1416 = vmatpush.bf16.msra.mxu1 %v2608_v13  ;;  %v2512_v58 = vor.u32 %v2810_v55, %v2511_v53  ;;  %1439 = vmatpush.bf16.msra.mxu2 %v2324_v59  ;;  %v2463_v13 = vld [vmem:[#allocation2 + $0x1b0] sm:$0xf]  ;;  %v2829_v53 = vld [vmem:[#allocation2 + $0x2bc] sm:$0xf0]  ;;  %v2401_v55 = vld [vmem:[#allocation2 + $0x140] sm:$0xf0] }
 0x153   :  { %v2464_v18 = vor.u32 %v2798_v15, %v2463_v13  ;;  %v2592_v56 = vor.u32 %v2829_v53, %v2591_v50  ;;  %v2593_v59 = vld [vmem:[#allocation2 + $0x2c0] sm:$0xf0]  ;;  %v2351_v9 = vld [vmem:[#allocation2 + $0xc8] sm:$0xf]  ;;  %v2817_v13 = vld [vmem:[#allocation2 + $0x25c] sm:$0xf0] }
 0x154   :  { %v2353_v15 = vld [vmem:[#allocation2 + $0xe0] sm:$0xf0] }
 0x155   :  { %1398 = vmatpush.bf16.msra.mxu0 %v2392_v23  ;;  %v2247_v23 = vld [vmem:[#allocation2] sm:$0xf]  ;;  %v3187_v47 = vpop.f32.mrf.mxu2 }
 0x156   :  { %1417 = vmatpush.bf16.msra.mxu1 %v2584_v26  ;;  %1440 = vmatpush.bf16.msra.mxu2 %v2300_v7  ;;  %v2248_v26 = vor.u32 %v2744_v24, %v2247_v23  ;;  %v3189_v51 = vpop.f32.mrf.mxu3  ;;  %v2569_v7 = vld [vmem:[#allocation2 + $0x290] sm:$0xf0]  ;;  %v2327_v24 = vld [vmem:[#allocation2 + $0x98] sm:$0xf] }
 0x159   :  { %1399 = vmatpush.bf16.msra.mxu0 %v2368_v30  ;;  %v2440_v30 = vor.u32 %v2792_v27, %v2439_v25  ;;  %v2763_v25 = vld [vmem:[#allocation2 + $0xac] sm:$0xf0] }
 0x15a   :  { %1418 = vmatpush.bf16.msra.mxu1 %v2560_v34  ;;  %1441 = vmatpush.bf16.msra.mxu2 %v2276_v19  ;;  %v2444_v34 = vor.u32 %v2789_v32, %v2441_v33  ;;  %v2814_v19 = vld [vmem:[#allocation2 + $0x24c] sm:$0xf]  ;;  %v2328_v28 = vor.u32 %v2763_v25, %v2327_v24 }
 0x15d   :  { %1400 = vmatpush.bf16.msra.mxu0 %v2344_v43  ;;  %v2428_v43 = vor.u32 %v2784_v40, %v2425_v41  ;;  %v698_v16 = vpop.f32.mrf.mxu2 }
 0x15e   :  { %1419 = vmatpush.bf16.msra.mxu1 %v2536_v44  ;;  %1442 = vmatpush.bf16.msra.mxu2 %v2252_v31  ;;  %v2832_v44 = vld [vmem:[#allocation2 + $0x2dc] sm:$0xf]  ;;  %v727_v21 = vpop.f32.mrf.mxu3  ;;  %v2329_v31 = vld [vmem:[#allocation2 + $0xb0] sm:$0xf0] }
 0x15f   :  { %v2620_v46 = vor.u32 %v2832_v44, %v2617_v45 }
 0x160   :  { %2214 = vmatmul.msk.bf16.gmra.mxu0 %vm375_vm2, %v2738_v62 }
 0x161   :  { %2218 = vmatmul.msk.bf16.gmra.mxu1 %vm375_vm2, %v2738_v62  ;;  %1401 = vmatpush.bf16.msra.mxu0 %v2320_v54  ;;  %v2516_v62 = vor.u32 %v2807_v60, %v2513_v61  ;;  %v2778_v54 = vld [vmem:[#allocation2 + $0x12c] sm:$0xf]  ;;  %v2375_v61 = vld [vmem:[#allocation2 + $0xf8] sm:$0xf] }
 0x162   :  { %1420 = vmatpush.bf16.msra.mxu1 %v2512_v58  ;;  %1511 = vmatpush.bf16.msrb.mxu2 %v2428_v43  ;;  %v2404_v57 = vor.u32 %v2778_v54, %v2401_v55  ;;  %v2826_v58 = vld [vmem:[#allocation2 + $0x2ac] sm:$0xf] }
 0x163   :  { %1458 = vmatpush.bf16.msra.mxu3 %v2516_v62  ;;  %v2596_v60 = vor.u32 %v2826_v58, %v2593_v59  ;;  %v2775_v62 = vld [vmem:[#allocation2 + $0x10c] sm:$0xf0]  ;;  %v2754_v43 = vld [vmem:[#allocation2 + $0x6c] sm:$0xf] }
 0x164   :  { %v2376_v0 = vor.u32 %v2775_v62, %v2375_v61  ;;  %v2799_v62 = vld [vmem:[#allocation2 + $0x1cc] sm:$0xf0] }
 0x165   :  { %1402 = vmatpush.bf16.msra.mxu0 %v2296_v2  ;;  %v2772_v2 = vld [vmem:[#allocation2 + $0xfc] sm:$0xf]  ;;  %v3193_v54 = vpop.f32.mrf.mxu2 }
 0x166   :  { %1512 = vmatpush.bf16.msrb.mxu2 %v2404_v57  ;;  %v2471_v57 = vld [vmem:[#allocation2 + $0x1b8] sm:$0xf]  ;;  %v3195_v61 = vpop.f32.mrf.mxu3 }
 0x167   :  { %1459 = vmatpush.bf16.msra.mxu3 %v2492_v10  ;;  %v2769_v10 = vld [vmem:[#allocation2 + $0xdc] sm:$0xf0] }
 0x16b   :  { %1460 = vmatpush.bf16.msra.mxu3 %v2468_v22  ;;  %v2548_v22 = vor.u32 %v2814_v19, %v2545_v20 }
 0x16f   :  { %1461 = vmatpush.bf16.msra.mxu3 %v2444_v34  ;;  %v2808_v34 = vld [vmem:[#allocation2 + $0x21c] sm:$0xf] }
 0x170   :  { %2215 = vmatmul.msk.bf16.gmra.mxu0 %vm375_vm2, %v2739_v1  ;;  %v2524_v36 = vor.u32 %v2808_v34, %v2521_v35  ;;  %v2836_v35 = vld [vmem:[#allocation2 + $0x2f4] sm:$0xf0] }
 0x171   :  { %2219 = vmatmul.msk.bf16.gmra.mxu1 %vm375_vm2, %v2739_v1  ;;  %v2487_v1 = vld [vmem:[#allocation2 + $0x1e0] sm:$0xf] }
 0x172   :  { %v2488_v6 = vor.u32 %v2804_v3, %v2487_v1  ;;  %v2823_v1 = vld [vmem:[#allocation2 + $0x28c] sm:$0xf0]  ;;  %v2377_v3 = vld [vmem:[#allocation2 + $0x110] sm:$0xf0] }
 0x173   :  { %1530 = vmatpush.bf16.msrb.mxu3 %v2620_v46  ;;  %v2568_v4 = vor.u32 %v2823_v1, %v2567_v63  ;;  %v2380_v5 = vor.u32 %v2772_v2, %v2377_v3  ;;  %v2305_v46 = vld [vmem:[#allocation2 + $0x80] sm:$0xf0]  ;;  %v2748_v63 = vld [vmem:[#allocation2 + $0x3c] sm:$0xf]  ;;  %v761_v1 = vpop.permute.xlu1 %760 }
 0x174   :  { %1421 = vmatpush.bf16.msra.mxu1 %v2488_v6  ;;  %v2820_v6 = vld [vmem:[#allocation2 + $0x27c] sm:$0xf]  ;;  %v2308_v50 = vor.u32 %v2754_v43, %v2305_v46  ;;  %v732_v43 = vpop.f32.mrf.mxu3  ;;  %v2782_v46 = vld [vmem:[#allocation2 + $0x144] sm:$0xf0] }
 0x175   :  { %v2572_v8 = vor.u32 %v2820_v6, %v2569_v7  ;;  %1513 = vmatpush.bf16.msrb.mxu2 %v2380_v5  ;;  %v2796_v6 = vld [vmem:[#allocation2 + $0x1bc] sm:$0xf]  ;;  %v2473_v7 = vld [vmem:[#allocation2 + $0x1d0] sm:$0xf0] }
 0x177   :  { %1531 = vmatpush.bf16.msrb.mxu3 %v2596_v60 }
 0x178   :  { %1422 = vmatpush.bf16.msra.mxu1 %v2464_v18 }
 0x17b   :  { %1532 = vmatpush.bf16.msrb.mxu3 %v2572_v8 }
 0x17c   :  { %1423 = vmatpush.bf16.msra.mxu1 %v2440_v30  ;;  %v2760_v30 = vld [vmem:[#allocation2 + $0x9c] sm:$0xf] }
 0x17d   :  { %v2332_v33 = vor.u32 %v2760_v30, %v2329_v31  ;;  %v2431_v30 = vld [vmem:[#allocation2 + $0x160] sm:$0xf]  ;;  %v2788_v31 = vld [vmem:[#allocation2 + $0x174] sm:$0xf0] }
 0x17e   :  { %v2432_v34 = vor.u32 %v2788_v31, %v2431_v30 }
 0x17f   :  { %1533 = vmatpush.bf16.msrb.mxu3 %v2548_v22  ;;  %v2257_v22 = vld [vmem:[#allocation2 + $0x20] sm:$0xf0] }
 0x180   :  { %2216 = vmatmul.msk.bf16.gmra.mxu0 %vm375_vm2, %v2740_v14  ;;  %1492 = vmatpush.bf16.msrb.mxu1 %v2616_v42  ;;  %v2805_v42 = vld [vmem:[#allocation2 + $0x1fc] sm:$0xf0] }
 0x181   :  { %2220 = vmatmul.msk.bf16.gmra.mxu1 %vm375_vm2, %v2740_v14  ;;  %v2272_v14 = vor.u32 %v2750_v12, %v2271_v11  ;;  %v2543_v11 = vld [vmem:[#allocation2 + $0x248] sm:$0xf]  ;;  %v2352_v12 = vor.u32 %v2769_v10, %v2351_v9  ;;  %v2496_v45 = vor.u32 %v2805_v42, %v2495_v39  ;;  %v2476_v9 = vor.u32 %v2796_v6, %v2473_v7  ;;  %v2625_v42 = vld [vmem:[#allocation2 + $0x2f8] sm:$0xf0]  ;;  %v771_v7 = vpop.permute.xlu2 %770 }
 0x182   :  { %v2544_v17 = vor.u32 %v2817_v13, %v2543_v11  ;;  %v2255_v11 = vld [vmem:[#allocation2 + $0x8] sm:$0xf]  ;;  %v2385_v6 = vld [vmem:[#allocation2 + $0x118] sm:$0xf0] }
 0x183   :  { %1403 = vmatpush.bf16.msra.mxu0 %v2272_v14  ;;  %v2766_v14 = vld [vmem:[#allocation2 + $0xcc] sm:$0xf]  ;;  %1534 = vmatpush.bf16.msrb.mxu3 %v2524_v36  ;;  %v2447_v13 = vld [vmem:[#allocation2 + $0x188] sm:$0xf]  ;;  %v2785_v36 = vld [vmem:[#allocation2 + $0x164] sm:$0xf] }
 0x184   :  { %1493 = vmatpush.bf16.msrb.mxu1 %v2592_v56  ;;  %v2356_v18 = vor.u32 %v2766_v14, %v2353_v15  ;;  %v2279_v56 = vld [vmem:[#allocation2 + $0x38] sm:$0xf] }
 0x186   :  { %1514 = vmatpush.bf16.msrb.mxu2 %v2356_v18  ;;  %v2742_v18 = vld [vmem:[#allocation2 + $0xc] sm:$0xf] }
 0x187   :  { %1404 = vmatpush.bf16.msra.mxu0 %v2248_v26  ;;  %v2519_v26 = vld [vmem:[#allocation2 + $0x218] sm:$0xf]  ;;  %v2260_v25 = vor.u32 %v2742_v18, %v2257_v22 }
 0x188   :  { %1494 = vmatpush.bf16.msrb.mxu1 %v2568_v4  ;;  %v2520_v32 = vor.u32 %v2811_v29, %v2519_v26  ;;  %v2472_v4 = vor.u32 %v2799_v62, %v2471_v57  ;;  %v2449_v26 = vld [vmem:[#allocation2 + $0x1a0] sm:$0xf0]  ;;  %v2827_v57 = vld [vmem:[#allocation2 + $0x2b4] sm:$0xf] }
 0x18a   :  { %1515 = vmatpush.bf16.msrb.mxu2 %v2332_v33 }
 0x18b   :  { %1473 = vmatpush.bf16.msrb.mxu0 %v2424_v38  ;;  %v2757_v38 = vld [vmem:[#allocation2 + $0x7c] sm:$0xf0] }
 0x18c   :  { %1495 = vmatpush.bf16.msrb.mxu1 %v2544_v17  ;;  %v2304_v41 = vor.u32 %v2757_v38, %v2303_v37  ;;  %v2793_v17 = vld [vmem:[#allocation2 + $0x19c] sm:$0xf0]  ;;  %v2433_v37 = vld [vmem:[#allocation2 + $0x178] sm:$0xf0]  ;;  %v703_v38 = vpop.f32.mrf.mxu2 }
 0x18e   :  { %1516 = vmatpush.bf16.msrb.mxu2 %v2308_v50 }
 0x18f   :  { %1474 = vmatpush.bf16.msrb.mxu0 %v2400_v52  ;;  %v2497_v52 = vld [vmem:[#allocation2 + $0x200] sm:$0xf0] }
 0x190   :  { %1496 = vmatpush.bf16.msrb.mxu1 %v2520_v32  ;;  %v2500_v55 = vor.u32 %v2802_v48, %v2497_v52  ;;  %v2623_v32 = vld [vmem:[#allocation2 + $0x2e0] sm:$0xf]  ;;  %v2599_v48 = vld [vmem:[#allocation2 + $0x2b0] sm:$0xf]  ;;  %v2830_v52 = vld [vmem:[#allocation2 + $0x2c4] sm:$0xf0] }
 0x191   :  { %v2624_v39 = vor.u32 %v2836_v35, %v2623_v32  ;;  %v2361_v32 = vld [vmem:[#allocation2 + $0xe8] sm:$0xf0] }
 0x192   :  { %1535 = vmatpush.bf16.msrb.mxu3 %v2500_v55 }
 0x193   :  { %1475 = vmatpush.bf16.msrb.mxu0 %v2376_v0  ;;  %v2281_v0 = vld [vmem:[#allocation2 + $0x50] sm:$0xf0] }
 0x194   :  { %1497 = vmatpush.bf16.msrb.mxu1 %v2496_v45  ;;  %v2284_v5 = vor.u32 %v2748_v63, %v2281_v0  ;;  %v2407_v45 = vld [vmem:[#allocation2 + $0x130] sm:$0xf]  ;;  %v2383_v63 = vld [vmem:[#allocation2 + $0x100] sm:$0xf]  ;;  %v2776_v0 = vld [vmem:[#allocation2 + $0x114] sm:$0xf0] }
 0x195   :  { %v2408_v50 = vor.u32 %v2782_v46, %v2407_v45  ;;  %v2812_v46 = vld [vmem:[#allocation2 + $0x234] sm:$0xf0] }
 0x196   :  { %1517 = vmatpush.bf16.msrb.mxu2 %v2284_v5  ;;  %1536 = vmatpush.bf16.msrb.mxu3 %v2476_v9  ;;  %v2824_v5 = vld [vmem:[#allocation2 + $0x294] sm:$0xf0] }
 0x197   :  { %1476 = vmatpush.bf16.msrb.mxu0 %v2352_v12  ;;  %v2745_v12 = vld [vmem:[#allocation2 + $0x1c] sm:$0xf0] }
 0x198   :  { %1498 = vmatpush.bf16.msrb.mxu1 %v2472_v4  ;;  %v2384_v4 = vor.u32 %v2776_v0, %v2383_v63  ;;  %v2755_v0 = vld [vmem:[#allocation2 + $0x74] sm:$0xf] }
 0x19a   :  { %1518 = vmatpush.bf16.msrb.mxu2 %v2260_v25 }
 0x19b   :  { %1477 = vmatpush.bf16.msrb.mxu0 %v2328_v28 }
 0x19f   :  { %1478 = vmatpush.bf16.msrb.mxu0 %v2304_v41  ;;  %v2833_v41 = vld [vmem:[#allocation2 + $0x2e4] sm:$0xf] }
 0x1cd   :  { %v600_v23 = vpop.f32.mrf.mxu0 }
 0x1ce   :  { %v629_v27 = vpop.f32.mrf.mxu1  ;;  %v697_v40 = vadd.f32 %v3187_v47, %v600_v23  ;;  %v2751_v47 = vld [vmem:[#allocation2 + $0x4c] sm:$0xf0]  ;;  %v2790_v23 = vld [vmem:[#allocation2 + $0x18c] sm:$0xf] }
 0x1cf   :  { %v726_v44 = vadd.f32 %v3189_v51, %v629_v27  ;;  %v2280_v51 = vor.u32 %v2751_v47, %v2279_v56  ;;  %v2452_v29 = vor.u32 %v2790_v23, %v2449_v26  ;;  %v2600_v56 = vor.u32 %v2830_v52, %v2599_v48  ;;  %v2409_v47 = vld [vmem:[#allocation2 + $0x148] sm:$0xf0]  ;;  %v2818_v26 = vld [vmem:[#allocation2 + $0x264] sm:$0xf0]  ;;  %v2761_v48 = vld [vmem:[#allocation2 + $0xa4] sm:$0xf] }
 0x1d0   :  { %v793_v58 = vadd.f32 %v756_v49, %v697_v40  ;;  %v2436_v40 = vor.u32 %v2785_v36, %v2433_v37  ;;  %v2553_v36 = vld [vmem:[#allocation2 + $0x268] sm:$0xf0] }
 0x1d1   :  { %v794_v2 = vadd.f32 %v756_v49, %v726_v44  ;;  %1479 = vmatpush.bf16.msrb.mxu0 %v2280_v51  ;;  %1537 = vmatpush.bf16.msrb.mxu3 %v2452_v29  ;;  %v2628_v44 = vor.u32 %v2833_v41, %v2625_v42  ;;  %v2764_v41 = vld [vmem:[#allocation2 + $0xb4] sm:$0xf0]  ;;  %v2527_v42 = vld [vmem:[#allocation2 + $0x220] sm:$0xf] }
 0x1d2   :  { %v809_v14 = vmax.f32 %v793_v58, 0.0  ;;  %v2528_v52 = vor.u32 %v2812_v46, %v2527_v42 }
 0x1d3   :  { %v810_v19 = vmax.f32 %v794_v2, 0.0 }
 0x1d5   :  { %v602_v53 = vpop.f32.mrf.mxu0 }
 0x1d6   :  { %v699_v59 = vadd.f32 %v698_v16, %v602_v53  ;;  %v631_v60 = vpop.f32.mrf.mxu1  ;;  %v2256_v16 = vor.u32 %v2745_v12, %v2255_v11  ;;  %v2779_v53 = vld [vmem:[#allocation2 + $0x134] sm:$0xf] }
 0x1d7   :  { %v728_v3 = vadd.f32 %v727_v21, %v631_v60  ;;  %v2448_v21 = vor.u32 %v2793_v17, %v2447_v13  ;;  %v2412_v58 = vor.u32 %v2779_v53, %v2409_v47  ;;  %v766_v60 = vpop.permute.xlu1 %765  ;;  %v2821_v13 = vld [vmem:[#allocation2 + $0x284] sm:$0xf] }
 0x1d8   :  { %v795_v8 = vadd.f32 %v761_v1, %v699_v59  ;;  %1480 = vmatpush.bf16.msrb.mxu0 %v2256_v16  ;;  %v2601_v59 = vld [vmem:[#allocation2 + $0x2c8] sm:$0xf0]  ;;  %v735_v16 = vpop.f32.mrf.mxu3  ;;  %v2809_v53 = vld [vmem:[#allocation2 + $0x224] sm:$0xf] }
 0x1d9   :  { %v796_v10 = vadd.f32 %v761_v1, %v728_v3  ;;  %1499 = vmatpush.bf16.msrb.mxu1 %v2448_v21  ;;  %v2604_v62 = vor.u32 %v2827_v57, %v2601_v59  ;;  %v2551_v21 = vld [vmem:[#allocation2 + $0x250] sm:$0xf] }
 0x1da   :  { %v811_v15 = vmax.f32 %v795_v8, 0.0  ;;  %v2552_v31 = vor.u32 %v2818_v26, %v2551_v21  ;;  %v2503_v59 = vld [vmem:[#allocation2 + $0x1f0] sm:$0xf] }
 0x1db   :  { %v812_v20 = vmax.f32 %v796_v10, 0.0  ;;  %v706_v10 = vpop.f32.mrf.mxu2 }
 0x1dc   :  { %v3197_v24 = vpack.c.bf16 %v811_v15, %v809_v14  ;;  %v2577_v14 = vld [vmem:[#allocation2 + $0x298] sm:$0xf0] }
 0x1dd   :  { %v3199_v27 = vpack.c.bf16 %v812_v20, %v810_v19  ;;  %v605_v28 = vpop.f32.mrf.mxu0  ;;  %v2580_v17 = vor.u32 %v2821_v13, %v2577_v14  ;;  %v2359_v19 = vld [vmem:[#allocation2 + $0xd0] sm:$0xf]  ;;  %v2770_v20 = vld [vmem:[#allocation2 + $0xe4] sm:$0xf0]  ;;  %v2797_v14 = vld [vmem:[#allocation2 + $0x1c4] sm:$0xf] }
 0x1de   :  { %v634_v33 = vpop.f32.mrf.mxu1  ;;  %1405 = vmatmul.bf16.vlgmr.msra.gmra.mxu0 %v3197_v24  ;;  %1443 = vmatmul.bf16.vlgmr.msra.gmra.mxu2 %v3197_v24  ;;  %v702_v49 = vadd.f32 %v3193_v54, %v605_v28  ;;  %v2575_v54 = vld [vmem:[#allocation2 + $0x280] sm:$0xf]  ;;  %v2360_v25 = vor.u32 %v2770_v20, %v2359_v19  ;;  %v2767_v28 = vld [vmem:[#allocation2 + $0xd4] sm:$0xf]  ;;  %v2455_v19 = vld [vmem:[#allocation2 + $0x190] sm:$0xf] }
 0x1df   :  { %1424 = vmatmul.bf16.vlgmr.msra.gmra.mxu1 %v3199_v27  ;;  %1462 = vmatmul.bf16.vlgmr.msra.gmra.mxu3 %v3199_v27  ;;  %v731_v55 = vadd.f32 %v3195_v61, %v634_v33  ;;  %v2773_v61 = vld [vmem:[#allocation2 + $0x104] sm:$0xf]  ;;  %v2576_v11 = vor.u32 %v2824_v5, %v2575_v54  ;;  %v2815_v33 = vld [vmem:[#allocation2 + $0x254] sm:$0xf]  ;;  %v2364_v35 = vor.u32 %v2767_v28, %v2361_v32  ;;  %v2313_v54 = vld [vmem:[#allocation2 + $0x88] sm:$0xf0] }
 0x1e0   :  { %1549 = vmatpush.bf16.msra.mxu0 %v2432_v34  ;;  %1568 = vmatpush.bf16.msra.mxu1 %v2624_v39  ;;  %v797_v1 = vadd.f32 %v766_v60, %v702_v49  ;;  %v2388_v12 = vor.u32 %v2773_v61, %v2385_v6  ;;  %v2556_v39 = vor.u32 %v2815_v33, %v2553_v36  ;;  %v2337_v49 = vld [vmem:[#allocation2 + $0xb8] sm:$0xf0]  ;;  %v2752_v5 = vld [vmem:[#allocation2 + $0x54] sm:$0xf0]  ;;  %v2479_v61 = vld [vmem:[#allocation2 + $0x1c0] sm:$0xf] }
 0x1e1   :  { %1587 = vmatpush.bf16.msra.mxu2 %v2436_v40  ;;  %1606 = vmatpush.bf16.msra.mxu3 %v2628_v44  ;;  %v798_v8 = vadd.f32 %v766_v60, %v731_v55  ;;  %v2335_v40 = vld [vmem:[#allocation2 + $0xa0] sm:$0xf]  ;;  %v2529_v55 = vld [vmem:[#allocation2 + $0x238] sm:$0xf0]  ;;  %v2340_v47 = vor.u32 %v2761_v48, %v2337_v49  ;;  %v2806_v60 = vld [vmem:[#allocation2 + $0x204] sm:$0xf0] }
 0x1e2   :  { %v813_v22 = vmax.f32 %v797_v1, 0.0  ;;  %v2336_v45 = vor.u32 %v2764_v41, %v2335_v40  ;;  %v2532_v57 = vor.u32 %v2809_v53, %v2529_v55  ;;  %v2504_v63 = vor.u32 %v2806_v60, %v2503_v59  ;;  %v2803_v1 = vld [vmem:[#allocation2 + $0x1f4] sm:$0xf]  ;;  %v2800_v6 = vld [vmem:[#allocation2 + $0x1d4] sm:$0xf0] }
 0x1e3   :  { %v814_v29 = vmax.f32 %v798_v8, 0.0  ;;  %v2480_v13 = vor.u32 %v2800_v6, %v2479_v61  ;;  %v2794_v20 = vld [vmem:[#allocation2 + $0x1a4] sm:$0xf0]  ;;  %v2265_v28 = vld [vmem:[#allocation2 + $0x28] sm:$0xf0] }
 0x1e4   :  { %1550 = vmatpush.bf16.msra.mxu0 %v2408_v50  ;;  %1569 = vmatpush.bf16.msra.mxu1 %v2600_v56  ;;  %v2311_v56 = vld [vmem:[#allocation2 + $0x70] sm:$0xf]  ;;  %v2456_v26 = vor.u32 %v2794_v20, %v2455_v19 }
 0x1e5   :  { %v607_v51 = vpop.f32.mrf.mxu0  ;;  %1588 = vmatpush.bf16.msra.mxu2 %v2412_v58  ;;  %1607 = vmatpush.bf16.msra.mxu3 %v2604_v62  ;;  %v2758_v58 = vld [vmem:[#allocation2 + $0x84] sm:$0xf0] }
 0x1e6   :  { %v704_v2 = vadd.f32 %v703_v38, %v607_v51  ;;  %v636_v3 = vpop.f32.mrf.mxu1  ;;  %v3219_v51 = vpop.f32.mrf.mxu2  ;;  %v2312_v62 = vor.u32 %v2758_v58, %v2311_v56 }
 0x1e7   :  { %v733_v9 = vadd.f32 %v732_v43, %v636_v3  ;;  %v2505_v3 = vld [vmem:[#allocation2 + $0x208] sm:$0xf0] }
 0x1e8   :  { %v799_v15 = vadd.f32 %v771_v7, %v704_v2  ;;  %1551 = vmatpush.bf16.msra.mxu0 %v2384_v4  ;;  %1570 = vmatpush.bf16.msra.mxu1 %v2576_v11  ;;  %v3221_v2 = vpop.f32.mrf.mxu3  ;;  %v2287_v4 = vld [vmem:[#allocation2 + $0x40] sm:$0xf]  ;;  %v2508_v8 = vor.u32 %v2803_v1, %v2505_v3 }
 0x1e9   :  { %v800_v18 = vadd.f32 %v771_v7, %v733_v9  ;;  %1589 = vmatpush.bf16.msra.mxu2 %v2388_v12  ;;  %1608 = vmatpush.bf16.msra.mxu3 %v2580_v17  ;;  %v2316_v7 = vor.u32 %v2755_v0, %v2313_v54  ;;  %v2749_v9 = vld [vmem:[#allocation2 + $0x44] sm:$0xf]  ;;  %v2288_v12 = vor.u32 %v2752_v5, %v2287_v4 }
 0x1ea   :  { %v815_v23 = vmax.f32 %v799_v15, 0.0  ;;  %v2481_v15 = vld [vmem:[#allocation2 + $0x1d8] sm:$0xf0] }
 0x1eb   :  { %v816_v30 = vmax.f32 %v800_v18, 0.0  ;;  %v2746_v18 = vld [vmem:[#allocation2 + $0x24] sm:$0xf0] }
 0x1ec   :  { %v3207_v34 = vpack.c.bf16 %v815_v23, %v813_v22  ;;  %1552 = vmatpush.bf16.msra.mxu0 %v2360_v25  ;;  %1571 = vmatpush.bf16.msra.mxu1 %v2552_v31  ;;  %v2484_v22 = vor.u32 %v2797_v14, %v2481_v15  ;;  %v2743_v23 = vld [vmem:[#allocation2 + $0x14] sm:$0xf] }
 0x1ed   :  { %v3209_v37 = vpack.c.bf16 %v816_v30, %v814_v29  ;;  %v610_v38 = vpop.f32.mrf.mxu0  ;;  %1590 = vmatpush.bf16.msra.mxu2 %v2364_v35  ;;  %1609 = vmatpush.bf16.msra.mxu3 %v2556_v39  ;;  %v2791_v29 = vld [vmem:[#allocation2 + $0x194] sm:$0xf]  ;;  %v2457_v30 = vld [vmem:[#allocation2 + $0x1a8] sm:$0xf0]  ;;  %v2268_v33 = vor.u32 %v2743_v23, %v2265_v28 }
 0x1ee   :  { %v639_v43 = vpop.f32.mrf.mxu1  ;;  %v3211_v44 = vadd.f32 %v706_v10, %v610_v38  ;;  %1410 = vmatmul.bf16.gmra.mxu0 %v3207_v34  ;;  %1448 = vmatmul.bf16.gmra.mxu2 %v3207_v34  ;;  %v2289_v10 = vld [vmem:[#allocation2 + $0x58] sm:$0xf0]  ;;  %v711_v31 = vpop.f32.mrf.mxu2  ;;  %v2460_v35 = vor.u32 %v2791_v29, %v2457_v30 }
 0x1ef   :  { %v3215_v50 = vadd.f32 %v735_v16, %v639_v43  ;;  %1429 = vmatmul.bf16.gmra.mxu1 %v3209_v37  ;;  %1467 = vmatmul.bf16.gmra.mxu3 %v3209_v37  ;;  %v2263_v16 = vld [vmem:[#allocation2 + $0x10] sm:$0xf]  ;;  %v2292_v21 = vor.u32 %v2749_v9, %v2289_v10 }
 0x1f0   :  { %1553 = vmatpush.bf16.msra.mxu0 %v2336_v45  ;;  %1572 = vmatpush.bf16.msra.mxu1 %v2528_v52  ;;  %v2264_v25 = vor.u32 %v2746_v18, %v2263_v16  ;;  %v740_v32 = vpop.f32.mrf.mxu3 }
 0x1f1   :  { %1591 = vmatpush.bf16.msra.mxu2 %v2340_v47  ;;  %1610 = vmatpush.bf16.msra.mxu3 %v2532_v57 }
 0x1f4   :  { %1554 = vmatpush.bf16.msra.mxu0 %v2312_v62  ;;  %1573 = vmatpush.bf16.msra.mxu1 %v2504_v63 }
 0x1f5   :  { %v3223_v11 = vpop.f32.mrf.mxu0  ;;  %1592 = vmatpush.bf16.msra.mxu2 %v2316_v7  ;;  %1611 = vmatpush.bf16.msra.mxu3 %v2508_v8 }
 0x1f6   :  { %v3225_v17 = vpop.f32.mrf.mxu1  ;;  %v3251_v43 = vpop.f32.mrf.mxu2 }
 0x1f8   :  { %1555 = vmatpush.bf16.msra.mxu0 %v2288_v12  ;;  %1574 = vmatpush.bf16.msra.mxu1 %v2480_v13  ;;  %v3253_v45 = vpop.f32.mrf.mxu3  ;;  %v2839_v12 = vld [vmem:[%s3333_s9 + $0x10] sm:$0xff] }
 0x1f9   :  { %1593 = vmatpush.bf16.msra.mxu2 %v2292_v21  ;;  %1612 = vmatpush.bf16.msra.mxu3 %v2484_v22 }
 0x1fc   :  { %1556 = vmatpush.bf16.msra.mxu0 %v2264_v25  ;;  %1575 = vmatpush.bf16.msra.mxu1 %v2456_v26  ;;  %v2840_v26 = vld [vmem:[%s3333_s9 + $0x18] sm:$0xff] }
 0x1fd   :  { %v615_v36 = vpop.f32.mrf.mxu0  ;;  %1594 = vmatpush.bf16.msra.mxu2 %v2268_v33  ;;  %1613 = vmatpush.bf16.msra.mxu3 %v2460_v35 }
 0x1fe   :  { %v644_v38 = vpop.f32.mrf.mxu1  ;;  %v3227_v39 = vadd.f32 %v711_v31, %v615_v36  ;;  %1481 = vmatmul.bf16.vlgmr.msrb.gmra.mxu0 %v3197_v24  ;;  %1519 = vmatmul.bf16.vlgmr.msrb.gmra.mxu2 %v3197_v24 }
 0x1ff   :  { %v3231_v40 = vadd.f32 %v740_v32, %v644_v38  ;;  %1500 = vmatmul.bf16.vlgmr.msrb.gmra.mxu1 %v3199_v27  ;;  %1538 = vmatmul.bf16.vlgmr.msrb.gmra.mxu3 %v3199_v27 }
 0x205   :  { %v3247_v41 = vpop.f32.mrf.mxu0 }
 0x206   :  { %v3249_v42 = vpop.f32.mrf.mxu1 }
 0x20e   :  { %1486 = vmatmul.bf16.gmra.mxu0 %v3207_v34  ;;  %1524 = vmatmul.bf16.gmra.mxu2 %v3207_v34 }
 0x20f   :  { %1505 = vmatmul.bf16.gmra.mxu1 %v3209_v37  ;;  %1543 = vmatmul.bf16.gmra.mxu3 %v3209_v37 }
 0x21e   :  { %1557 = vmatmul.bf16.vlgmr.msra.gmra.mxu0 %v3197_v24  ;;  %1595 = vmatmul.bf16.vlgmr.msra.gmra.mxu2 %v3197_v24 }
 0x21f   :  { %1576 = vmatmul.bf16.vlgmr.msra.gmra.mxu1 %v3199_v27  ;;  %1614 = vmatmul.bf16.vlgmr.msra.gmra.mxu3 %v3199_v27 }
 0x22e   :  { %1562 = vmatmul.bf16.gmra.mxu0 %v3207_v34  ;;  %1600 = vmatmul.bf16.gmra.mxu2 %v3207_v34 }
 0x22f   :  { %1581 = vmatmul.bf16.gmra.mxu1 %v3209_v37  ;;  %1619 = vmatmul.bf16.gmra.mxu3 %v3209_v37 }
 0x25b   :  { %v1406_v46 = vpop.f32.mrf.mxu0 }
 0x25c   :  { %v1425_v48 = vpop.f32.mrf.mxu1 }
 0x25d   :  { %v1426_v4 = vadd.f32 %v1425_v48, %v1406_v46 }
 0x261   :  { %v1444_v49 = vpop.f32.mrf.mxu2 }
 0x262   :  { %v1463_v52 = vpop.f32.mrf.mxu3 }
 0x263   :  { %v1408_v53 = vpop.f32.mrf.mxu0  ;;  %v1464_v15 = vadd.f32 %v1463_v52, %v1444_v49 }
 0x264   :  { %v1427_v55 = vpop.f32.mrf.mxu1 }
 0x265   :  { %v1428_v1 = vadd.f32 %v1427_v55, %v1408_v53  ;;  %v2841_v53 = vld [vmem:[%s3333_s9 + $0x20] sm:$0xff] }
 0x266   :  { %v2837_v55 = vld [vmem:[%s3333_s9] sm:$0xff] }
 0x267   :  { %v1634_v6 = vpack.c.bf16 %v1428_v1, %v1426_v4  ;;  %v2842_v4 = vld [vmem:[%s3333_s9 + $0x28] sm:$0xff] }
 0x269   :  { %v1446_v56 = vpop.f32.mrf.mxu2 }
 0x26a   :  { %v1465_v47 = vpop.f32.mrf.mxu3 }
 0x26b   :  { %v1411_v57 = vpop.f32.mrf.mxu0  ;;  %v1466_v13 = vadd.f32 %v1465_v47, %v1446_v56 }
 0x26c   :  { %v1430_v58 = vpop.f32.mrf.mxu1 }
 0x26d   :  { %v1431_v0 = vadd.f32 %v1430_v58, %v1411_v57  ;;  %v1635_v16 = vpack.c.bf16 %v1466_v13, %v1464_v15 }
 0x271   :  { %v1449_v59 = vpop.f32.mrf.mxu2 }
 0x272   :  { %v1468_v60 = vpop.f32.mrf.mxu3 }
 0x273   :  { %v1413_v62 = vpop.f32.mrf.mxu0  ;;  %v1469_v7 = vadd.f32 %v1468_v60, %v1449_v59 }
 0x274   :  { %v1432_v63 = vpop.f32.mrf.mxu1 }
 0x275   :  { %v1433_v54 = vadd.f32 %v1432_v63, %v1413_v62 }
 0x277   :  { %v1636_v3 = vpack.c.bf16 %v1433_v54, %v1431_v0 }
 0x279   :  { %1724 = vmatpush.bf16.msrb.mxu2 %v1636_v3  ;;  %v1451_v5 = vpop.f32.mrf.mxu2 }
 0x27a   :  { %v1470_v61 = vpop.f32.mrf.mxu3 }
 0x27b   :  { %v1471_v8 = vadd.f32 %v1470_v61, %v1451_v5  ;;  %v1482_v9 = vpop.f32.mrf.mxu0  ;;  %v2838_v5 = vld [vmem:[%s3333_s9 + $0x8] sm:$0xff] }
 0x27c   :  { %v1501_v10 = vpop.f32.mrf.mxu1 }
 0x27d   :  { %v1637_v14 = vpack.c.bf16 %v1471_v8, %v1469_v7  ;;  %1725 = vmatpush.bf16.msrb.mxu2 %v1634_v6  ;;  %v1502_v33 = vadd.f32 %v1501_v10, %v1482_v9 }
 0x27f   :  { %1743 = vmatpush.bf16.msrb.mxu3 %v1637_v14 }
 0x280   :  { %2657 = vmatmul.msk.bf16.vlgmr.msrb.gmra.mxu2 %vm1657_vm3, %v2839_v12 }
 0x281   :  { %1849 = vmatpush.bf16.msra.mxu2 %v3207_v34  ;;  %v1520_v18 = vpop.f32.mrf.mxu2 }
 0x282   :  { %v1539_v19 = vpop.f32.mrf.mxu3 }
 0x283   :  { %1744 = vmatpush.bf16.msrb.mxu3 %v1635_v16  ;;  %v1484_v20 = vpop.f32.mrf.mxu0  ;;  %v1540_v57 = vadd.f32 %v1539_v19, %v1520_v18 }
 0x284   :  { %v1503_v21 = vpop.f32.mrf.mxu1 }
 0x285   :  { %1850 = vmatpush.bf16.msra.mxu2 %v3197_v24  ;;  %v1504_v32 = vadd.f32 %v1503_v21, %v1484_v20  ;;  %v2843_v21 = vld [vmem:[%s3333_s9 + $0x30] sm:$0xff] }
 0x286   :  { %2659 = vmatmul.msk.bf16.vlgmr.msrb.gmra.mxu3 %vm1657_vm3, %v2839_v12 }
 0x287   :  { %1868 = vmatpush.bf16.msra.mxu3 %v3209_v37  ;;  %v1643_v38 = vpack.c.bf16 %v1504_v32, %v1502_v33 }
 0x289   :  { %v1522_v22 = vpop.f32.mrf.mxu2 }
 0x28a   :  { %v1541_v34 = vpop.f32.mrf.mxu3 }
 0x28b   :  { %1869 = vmatpush.bf16.msra.mxu3 %v3199_v27  ;;  %v1487_v23 = vpop.f32.mrf.mxu0  ;;  %v1542_v56 = vadd.f32 %v1541_v34, %v1522_v22 }
 0x28c   :  { %v1506_v25 = vpop.f32.mrf.mxu1 }
 0x28d   :  { %v1507_v31 = vadd.f32 %v1506_v25, %v1487_v23  ;;  %v1644_v58 = vpack.c.bf16 %v1542_v56, %v1540_v57 }
 0x290   :  { %2658 = vmatmul.msk.bf16.gmra.mxu2 %vm1657_vm3, %v2840_v26 }
 0x291   :  { %v1525_v24 = vpop.f32.mrf.mxu2 }
 0x292   :  { %v1544_v28 = vpop.f32.mrf.mxu3 }
 0x293   :  { %v1489_v29 = vpop.f32.mrf.mxu0  ;;  %v1545_v46 = vadd.f32 %v1544_v28, %v1525_v24 }
 0x294   :  { %v1508_v30 = vpop.f32.mrf.mxu1 }
 0x295   :  { %v1509_v37 = vadd.f32 %v1508_v30, %v1489_v29 }
 0x296   :  { %2660 = vmatmul.msk.bf16.gmra.mxu3 %vm1657_vm3, %v2840_v26  ;;  %v2844_v26 = vld [vmem:[%s3333_s9 + $0x38] sm:$0xff] }
 0x297   :  { %v1645_v27 = vpack.c.bf16 %v1509_v37, %v1507_v31 }
 0x299   :  { %1670 = vmatpush.bf16.msrb.mxu0 %v1645_v27  ;;  %v1527_v35 = vpop.f32.mrf.mxu2 }
 0x29a   :  { %v1546_v36 = vpop.f32.mrf.mxu3 }
 0x29b   :  { %v1547_v48 = vadd.f32 %v1546_v36, %v1527_v35  ;;  %v1558_v49 = vpop.f32.mrf.mxu0 }
 0x29c   :  { %v1577_v52 = vpop.f32.mrf.mxu1 }
 0x29d   :  { %v1646_v47 = vpack.c.bf16 %v1547_v48, %v1545_v46  ;;  %1671 = vmatpush.bf16.msrb.mxu0 %v1643_v38  ;;  %v1578_v14 = vadd.f32 %v1577_v52, %v1558_v49 }
 0x29f   :  { %1689 = vmatpush.bf16.msrb.mxu1 %v1646_v47 }
 0x2a0   :  { %2645 = vmatmul.msk.bf16.vlgmr.msrb.gmra.mxu0 %vm1657_vm3, %v2841_v53  ;;  %2685 = vmatmul.msk.bf16.vlgmr.msra.gmra.mxu2 %vm1657_vm3, %v2837_v55 }
 0x2a1   :  { %v1596_v59 = vpop.f32.mrf.mxu2 }
 0x2a2   :  { %v1615_v60 = vpop.f32.mrf.mxu3 }
 0x2a3   :  { %1690 = vmatpush.bf16.msrb.mxu1 %v1644_v58  ;;  %v1560_v62 = vpop.f32.mrf.mxu0  ;;  %v1616_v23 = vadd.f32 %v1615_v60, %v1596_v59 }
 0x2a4   :  { %v1579_v63 = vpop.f32.mrf.mxu1 }
 0x2a5   :  { %v1580_v12 = vadd.f32 %v1579_v63, %v1560_v62 }
 0x2a6   :  { %2647 = vmatmul.msk.bf16.vlgmr.msrb.gmra.mxu1 %vm1657_vm3, %v2841_v53  ;;  %2687 = vmatmul.msk.bf16.vlgmr.msra.gmra.mxu3 %vm1657_vm3, %v2837_v55 }
 0x2a7   :  { %v1761_v18 = vpack.c.bf16 %v1580_v12, %v1578_v14 }
 0x2a9   :  { %v1598_v0 = vpop.f32.mrf.mxu2 }
 0x2aa   :  { %v1617_v54 = vpop.f32.mrf.mxu3 }
 0x2ab   :  { %v1563_v1 = vpop.f32.mrf.mxu0  ;;  %v1618_v22 = vadd.f32 %v1617_v54, %v1598_v0  ;;  %v1898_v54 = vpop.permute.xlu2 %1897 }
 0x2ac   :  { %v1582_v3 = vpop.f32.mrf.mxu1 }
 0x2ad   :  { %v1583_v9 = vadd.f32 %v1582_v3, %v1563_v1  ;;  %v1762_v25 = vpack.c.bf16 %v1618_v22, %v1616_v23  ;;  %v1903_v23 = vpop.permute.xlu0 %1902 }
 0x2b0   :  { %2646 = vmatmul.msk.bf16.gmra.mxu0 %vm1657_vm3, %v2842_v4  ;;  %2686 = vmatmul.msk.bf16.gmra.mxu2 %vm1657_vm3, %v2838_v5 }
 0x2b1   :  { %v1601_v61 = vpop.f32.mrf.mxu2 }
 0x2b2   :  { %v1620_v6 = vpop.f32.mrf.mxu3 }
 0x2b3   :  { %v1565_v7 = vpop.f32.mrf.mxu0  ;;  %v1621_v19 = vadd.f32 %v1620_v6, %v1601_v61 }
 0x2b4   :  { %v1584_v8 = vpop.f32.mrf.mxu1 }
 0x2b5   :  { %v1585_v10 = vadd.f32 %v1584_v8, %v1565_v7 }
 0x2b6   :  { %2648 = vmatmul.msk.bf16.gmra.mxu1 %vm1657_vm3, %v2842_v4  ;;  %2688 = vmatmul.msk.bf16.gmra.mxu3 %vm1657_vm3, %v2838_v5 }
 0x2b7   :  { %v1763_v13 = vpack.c.bf16 %v1585_v10, %v1583_v9 }
 0x2b9   :  { %1787 = vmatpush.bf16.msra.mxu0 %v1763_v13  ;;  %v1603_v15 = vpop.f32.mrf.mxu2 }
 0x2ba   :  { %v1622_v16 = vpop.f32.mrf.mxu3 }
 0x2bb   :  { %v1623_v20 = vadd.f32 %v1622_v16, %v1603_v15 }
 0x2bd   :  { %v1764_v34 = vpack.c.bf16 %v1623_v20, %v1621_v19  ;;  %1788 = vmatpush.bf16.msra.mxu0 %v1761_v18 }
 0x2bf   :  { %1806 = vmatpush.bf16.msra.mxu1 %v1764_v34 }
 0x2c0   :  { %2673 = vmatmul.msk.bf16.vlgmr.msra.gmra.mxu0 %vm1657_vm3, %v2843_v21 }
 0x2c3   :  { %1807 = vmatpush.bf16.msra.mxu1 %v1762_v25  ;;  %v1893_v25 = vpop.permute.xlu2 %1892 }
 0x2c6   :  { %2675 = vmatmul.msk.bf16.vlgmr.msra.gmra.mxu1 %vm1657_vm3, %v2843_v21 }
 0x2d0   :  { %2674 = vmatmul.msk.bf16.gmra.mxu0 %vm1657_vm3, %v2844_v26 }
 0x2d6   :  { %2676 = vmatmul.msk.bf16.gmra.mxu1 %vm1657_vm3, %v2844_v26 }
 0x303   :  { %v1727_v24 = vpop.f32.mrf.mxu2 }
 0x309   :  { %v1746_v28 = vpop.f32.mrf.mxu3 }
 0x30b   :  { %v1729_v29 = vpop.f32.mrf.mxu2 }
 0x311   :  { %v1748_v31 = vpop.f32.mrf.mxu3 }
 0x313   :  { %v1732_v27 = vpop.f32.mrf.mxu2 }
 0x319   :  { %v1751_v35 = vpop.f32.mrf.mxu3 }
 0x31b   :  { %v1734_v38 = vpop.f32.mrf.mxu2 }
 0x31d   :  { %v1673_v30 = vpop.f32.mrf.mxu0 }
 0x31e   :  { %v1728_v4 = vadd.f32 %v1727_v24, %v1673_v30  ;;  %v1888_v24 = vpop.permute.xlu1 %1887 }
 0x321   :  { %v1753_v49 = vpop.f32.mrf.mxu3 }
 0x323   :  { %v1692_v37 = vpop.f32.mrf.mxu1  ;;  %v1852_v52 = vpop.f32.mrf.mxu2 }
 0x324   :  { %v1747_v18 = vadd.f32 %v1746_v28, %v1692_v37 }
 0x325   :  { %v1675_v32 = vpop.f32.mrf.mxu0 }
 0x326   :  { %v1730_v1 = vadd.f32 %v1729_v29, %v1675_v32 }
 0x329   :  { %v1871_v56 = vpop.f32.mrf.mxu3 }
 0x32b   :  { %v1694_v33 = vpop.f32.mrf.mxu1  ;;  %v1854_v57 = vpop.f32.mrf.mxu2 }
 0x32c   :  { %v1749_v13 = vadd.f32 %v1748_v31, %v1694_v33 }
 0x32d   :  { %v1678_v36 = vpop.f32.mrf.mxu0 }
 0x32e   :  { %v1733_v0 = vadd.f32 %v1732_v27, %v1678_v36 }
 0x331   :  { %v1873_v59 = vpop.f32.mrf.mxu3 }
 0x333   :  { %v1697_v46 = vpop.f32.mrf.mxu1  ;;  %v1857_v63 = vpop.f32.mrf.mxu2 }
 0x334   :  { %v1752_v8 = vadd.f32 %v1751_v35, %v1697_v46 }
 0x335   :  { %v1680_v48 = vpop.f32.mrf.mxu0 }
 0x336   :  { %v1735_v9 = vadd.f32 %v1734_v38, %v1680_v48 }
 0x339   :  { %v1876_v6 = vpop.f32.mrf.mxu3 }
 0x33b   :  { %v1699_v53 = vpop.f32.mrf.mxu1  ;;  %v1859_v20 = vpop.f32.mrf.mxu2 }
 0x33c   :  { %v1754_v29 = vadd.f32 %v1753_v49, %v1699_v53 }
 0x33d   :  { %v1790_v55 = vpop.f32.mrf.mxu0 }
 0x33e   :  { %v1819_v61 = vadd.f32 %v1790_v55, %v1728_v4  ;;  %v781_v4 = vpop.permute.xlu1 %780 }
 0x340   :  { %v1853_v19 = vadd.f32 %v1852_v52, %v1819_v61  ;;  %v786_v61 = vpop.permute.xlu2 %785 }
 0x341   :  { %v1878_v37 = vpop.f32.mrf.mxu3 }
 0x342   :  { %v1905_v35 = vadd.f32 %v1888_v24, %v1853_v19 }
 0x343   :  { %v1809_v47 = vpop.f32.mrf.mxu1 }
 0x344   :  { %v1820_v26 = vadd.f32 %v1809_v47, %v1747_v18 }
 0x345   :  { %v1792_v58 = vpop.f32.mrf.mxu0 }
 0x346   :  { %v1821_v5 = vadd.f32 %v1792_v58, %v1730_v1  ;;  %v1872_v28 = vadd.f32 %v1871_v56, %v1820_v26  ;;  %v1913_v58 = vmax.f32 %v1905_v35, 0.0 }
 0x348   :  { %v1855_v14 = vadd.f32 %v1854_v57, %v1821_v5  ;;  %v1906_v49 = vadd.f32 %v1888_v24, %v1872_v28  ;;  %v776_v5 = vpop.permute.xlu0 %775  ;;  %v1941_v19 = vpop.permute.xlu2 %1940 }
 0x34a   :  { %v1907_v30 = vadd.f32 %v1893_v25, %v1855_v14  ;;  %v1914_v56 = vmax.f32 %v1906_v49, 0.0 }
 0x34b   :  { %v1811_v60 = vpop.f32.mrf.mxu1 }
 0x34c   :  { %v1822_v21 = vadd.f32 %v1811_v60, %v1749_v13  ;;  %v1915_v48 = vmax.f32 %v1907_v30, 0.0  ;;  %v805_v30 = vadd.f32 %v786_v61, %v3227_v39  ;;  %v743_v39 = vadd.f32 %v3253_v45, %v3249_v42 }
 0x34d   :  { %v1795_v62 = vpop.f32.mrf.mxu0 }
 0x34e   :  { %v1823_v3 = vadd.f32 %v1795_v62, %v1733_v0  ;;  %v1874_v31 = vadd.f32 %v1873_v59, %v1822_v21  ;;  %v2845_v59 = vld [vmem:[%s3335_s11] sm:$0xff] }
 0x350   :  { %v1858_v10 = vadd.f32 %v1857_v63, %v1823_v3  ;;  %v1908_v60 = vadd.f32 %v1893_v25, %v1874_v31  ;;  %v1925_v63 = vpack.c.bf16 %v1915_v48, %v1913_v58  ;;  %v2846_v3 = vld [vmem:[%s3335_s11 + $0x8] sm:$0xff]  ;;  %v791_v14 = vpop.permute.xlu0 %790  ;;  %v714_v31 = vadd.f32 %v3251_v43, %v3247_v41  ;;  %s2913_s11 = smov [#allocation5]  }
 0x351   :  { %v808_v43 = vadd.f32 %v791_v14, %v743_v39  ;;  %s2035_s1 = sshll.u32 %s2913_s11, 4  ;;  %s2036_s1 = int_to_ptr.vmem [resolvable:$true] %s2035_s1 }
 0x352   :  { %v1909_v22 = vadd.f32 %v1898_v54, %v1858_v10  ;;  %v1916_v0 = vmax.f32 %v1908_v60, 0.0 }
 0x353   :  { %v1814_v7 = vpop.f32.mrf.mxu1 }
 0x354   :  { %v1824_v15 = vadd.f32 %v1814_v7, %v1752_v8  ;;  %v1917_v33 = vmax.f32 %v1909_v22, 0.0  ;;  %v801_v8 = vadd.f32 %v776_v5, %v3211_v44  ;;  %v738_v44 = vadd.f32 %v3221_v2, %v3225_v17 }
 0x355   :  { %v1797_v12 = vpop.f32.mrf.mxu0 }
 0x356   :  { %v1825_v16 = vadd.f32 %v1797_v12, %v1735_v9  ;;  %v1877_v32 = vadd.f32 %v1876_v6, %v1824_v15  ;;  %v1936_v6 = vpop.permute.xlu1 %1935  ;;  %v709_v12 = vadd.f32 %v3219_v51, %v3223_v11  ;;  %v804_v11 = vadd.f32 %v781_v4, %v738_v44 }
 0x358   :  { %v1860_v34 = vadd.f32 %v1859_v20, %v1825_v16  ;;  %v1910_v52 = vadd.f32 %v1898_v54, %v1877_v32  ;;  %v1926_v54 = vpack.c.bf16 %v1916_v0, %v1914_v56  ;;  %v802_v16 = vadd.f32 %v776_v5, %v3215_v50 }
 0x359   :  { %v803_v21 = vadd.f32 %v781_v4, %v709_v12 }
 0x35a   :  { %v1911_v27 = vadd.f32 %v1903_v23, %v1860_v34  ;;  %v1918_v53 = vmax.f32 %v1910_v52, 0.0 }
 0x35b   :  { %v1816_v36 = vpop.f32.mrf.mxu1 }
 0x35c   :  { %v1919_v38 = vmax.f32 %v1911_v27, 0.0  ;;  %v1826_v46 = vadd.f32 %v1816_v36, %v1754_v29  ;;  %v1946_v29 = vpop.permute.xlu0 %1945 }
 0x35e   :  { %v1927_v55 = vpack.c.bf16 %v1919_v38, %v1917_v33  ;;  %v1879_v57 = vadd.f32 %v1878_v37, %v1826_v46  ;;  %v806_v33 = vadd.f32 %v786_v61, %v3231_v40  ;;  %v1951_v46 = vpop.permute.xlu1 %1950  ;;  %v807_v37 = vadd.f32 %v791_v14, %v714_v31 }
 0x360   :  { %v1912_v47 = vadd.f32 %v1903_v23, %v1879_v57  ;;  %1975 = vmatpush.bf16.msrb.mxu0 %v1927_v55 }
 0x362   :  { %v1920_v62 = vmax.f32 %v1912_v47, 0.0 }
 0x364   :  { %v1928_v1 = vpack.c.bf16 %v1920_v62, %v1918_v53  ;;  %1976 = vmatpush.bf16.msrb.mxu0 %v1925_v63 }
 0x366   :  { %1994 = vmatpush.bf16.msrb.mxu1 %v1928_v1 }
 0x367   :  { %2697 = vmatmul.msk.bf16.vlgmr.msrb.gmra.mxu0 %vm1657_vm3, %v2845_v59 }
 0x36a   :  { %1995 = vmatpush.bf16.msrb.mxu1 %v1926_v54 }
 0x36d   :  { %2699 = vmatmul.msk.bf16.vlgmr.msrb.gmra.mxu1 %vm1657_vm3, %v2845_v59 }
 0x377   :  { %2698 = vmatmul.msk.bf16.gmra.mxu0 %vm1657_vm3, %v2846_v3 }
 0x37d   :  { %2700 = vmatmul.msk.bf16.gmra.mxu1 %vm1657_vm3, %v2846_v3 }
 0x3e4   :  { %v1978_v7 = vpop.f32.mrf.mxu0 }
 0x3e5   :  { %v1979_v9 = vadd.f32 %v1978_v7, %v1936_v6 }
 0x3e7   :  { %v2007_v10 = vadd.f32 %v1979_v9, %v801_v8 }
 0x3e9   :  { %v2015_v13 = vmax.f32 %v2007_v10, 0.0 }
 0x3ea   :  { %v1997_v15 = vpop.f32.mrf.mxu1 }
 0x3eb   :  { %2023 = vst [vmem:[#allocation5] sm:$0xff] %v2015_v13  ;;  %v1998_v18 = vadd.f32 %v1997_v15, %v1936_v6 }
 0x3ec   :  { %v1980_v20 = vpop.f32.mrf.mxu0 }
 0x3ed   :  { %v2008_v22 = vadd.f32 %v1998_v18, %v802_v16  ;;  %v1981_v34 = vadd.f32 %v1980_v20, %v1941_v19 }
 0x3ef   :  { %v2016_v23 = vmax.f32 %v2008_v22, 0.0  ;;  %v2009_v25 = vadd.f32 %v1981_v34, %v803_v21 }
 0x3f1   :  { %2024 = vst [vmem:[#allocation5 + $0x8] sm:$0xff] %v2016_v23  ;;  %v2017_v26 = vmax.f32 %v2009_v25, 0.0 }
 0x3f2   :  { %v1999_v51 = vpop.f32.mrf.mxu1 }
 0x3f3   :  { %2025 = vst [vmem:[#allocation5 + $0x10] sm:$0xff] %v2017_v26  ;;  %v2000_v24 = vadd.f32 %v1999_v51, %v1941_v19 }
 0x3f4   :  { %v1983_v50 = vpop.f32.mrf.mxu0 }
 0x3f5   :  { %v2010_v32 = vadd.f32 %v2000_v24, %v804_v11  ;;  %v1984_v27 = vadd.f32 %v1983_v50, %v1946_v29 }
 0x3f7   :  { %v2018_v35 = vmax.f32 %v2010_v32, 0.0  ;;  %v2011_v36 = vadd.f32 %v1984_v27, %v805_v30 }
 0x3f9   :  { %2026 = vst [vmem:[#allocation5 + $0x18] sm:$0xff] %v2018_v35  ;;  %v2019_v2 = vmax.f32 %v2011_v36, 0.0 }
 0x3fa   :  { %v2002_v17 = vpop.f32.mrf.mxu1 }
 0x3fb   :  { %2027 = vst [vmem:[#allocation5 + $0x20] sm:$0xff] %v2019_v2  ;;  %v2003_v38 = vadd.f32 %v2002_v17, %v1946_v29 }
 0x3fc   :  { %v1985_v28 = vpop.f32.mrf.mxu0 }
 0x3fd   :  { %v2012_v48 = vadd.f32 %v2003_v38, %v806_v33  ;;  %v1986_v52 = vadd.f32 %v1985_v28, %v1951_v46 }
 0x3ff   :  { %v2020_v55 = vmax.f32 %v2012_v48, 0.0  ;;  %v2013_v57 = vadd.f32 %v1986_v52, %v807_v37 }
 0x401   :  { %2028 = vst [vmem:[#allocation5 + $0x28] sm:$0xff] %v2020_v55  ;;  %v2021_v58 = vmax.f32 %v2013_v57, 0.0 }
 0x402   :  { %v2004_v41 = vpop.f32.mrf.mxu1 }
 0x403   :  { %2029 = vst [vmem:[#allocation5 + $0x30] sm:$0xff] %v2021_v58  ;;  %v2005_v60 = vadd.f32 %v2004_v41, %v1951_v46 }
 0x405   :  { %v2014_v40 = vadd.f32 %v2005_v60, %v808_v43 }
 0x407   :  { %v2022_v47 = vmax.f32 %v2014_v40, 0.0 }
 0x409   :  { %2030 = vst [vmem:[#allocation5 + $0x38] sm:$0xff] %v2022_v47 }
 0x40a   :  { %2043 = dma.vmem_to_hbm [thread:$0]  %s2036_s1, 1024, %s2038_s19, [#allocation4], %s2914_s20, %s2914_s20, %s2915_s10  }
 0x40b   :  { %2907 = dma.done.wait [#allocation4], 1024  }
 0x40c   :  { %2908 = vsyncadd [#allocation4], 4294966272 }
 0x40d   :  { %2048 = vsyncpa [#allocation3], 1 }
 0x40e   :  { %2049 = vsyncpa [#allocation4], 1 }

</bundles_post_ra>
